<compile_context>
chip_gen: v7x
topology: tpu7x:2x2x1
jax: 0.10.0
libtpu: 0.0.40
codegen_flags: <defaults>
</compile_context>

<pallas_src>
import functools

import jax
import jax.numpy as jnp
from jax.experimental import pallas as pl
from jax.experimental.pallas import tpu as pltpu

HIDDEN_SIZE = 64
INPUT_SIZE = 11   # len(features)
NUM_LAYERS = 1
OUTPUT_SIZE = 1

H_PAD = 128                                   # hidden padded to full lane width
_PRECISION = jax.lax.Precision.HIGHEST        # fp32 parity with PyTorch fp32

# Row offsets inside the single packed weight operand (all 8-sublane aligned).
_OFF_IH = 0                                   # rows [0, 16):   w_ih^T   (I real rows)
_OFF_HH = 16                                  # rows [16, 144): w_hh^T   (padded 128x128)
_OFF_B = _OFF_HH + H_PAD                      # row 144: fused rnn bias (b_ih + b_hh)
_OFF_FC = _OFF_B + 8                          # row 152: w_fc
_OFF_BFC = _OFF_FC + 8                        # row 160, lane 0: b_fc
_W_ROWS = _OFF_BFC + 8                        # 168 total rows (~86 KiB, trivial VMEM)


def _rnn_kernel(x_ref, w_ref, out_ref, *, T, B, I):
    # x_ref: (T*B, I) time-major.  w_ref: (_W_ROWS, H_PAD).  out_ref: (B, 1)
    w_ih = w_ref[_OFF_IH:_OFF_IH + I, :]            # (I, H_PAD)
    w_hh = w_ref[_OFF_HH:_OFF_HH + H_PAD, :]        # (H_PAD, H_PAD), hoisted once
    bias = w_ref[_OFF_B:_OFF_B + 1, :]              # (1, H_PAD) = b_ih + b_hh (pre-fused)
    w_fc = w_ref[_OFF_FC:_OFF_FC + 1, :]            # (1, H_PAD)
    b_fc = w_ref[_OFF_BFC:_OFF_BFC + 1, 0:1]        # (1, 1)

    # Input projection for ALL timesteps as one MXU matmul; bias hoisted out of
    # the loop.  Result is time-major: rows [t*B, (t+1)*B) belong to timestep t.
    xp = jnp.dot(x_ref[...], w_ih, precision=_PRECISION,
                 preferred_element_type=jnp.float32) + bias      # (T*B, H_PAD)

    # Serial recurrence: h carried in vregs, one (B,H)@(H,H) MXU dot per step.
    # Each step has a true data dependency through tanh, so the chain is latency
    # bound; time-major xp makes every per-step read a contiguous, tile-aligned
    # static slice.  T is small and static here; for large T switch to
    # lax.fori_loop(..., unroll=k) with xp held in VMEM scratch.
    h = jnp.zeros((B, H_PAD), jnp.float32)
    for t in range(T):
        h = jnp.tanh(xp[t * B:(t + 1) * B, :]
                     + jnp.dot(h, w_hh, precision=_PRECISION,
                               preferred_element_type=jnp.float32))

    # fc head on the last hidden state (output_size == 1): VPU multiply + lane
    # reduction instead of a 1-column MXU matmul.  Pad lanes are zero in both
    # h and w_fc, so they do not contribute.
    out = jnp.sum(h * w_fc, axis=-1, keepdims=True) + b_fc
    out_ref[...] = out.astype(out_ref.dtype)


@jax.jit
def rnn_forward(x, params):
    """x: (B, T, I) float32, batch_first like the PyTorch module."""
    B, T, I = x.shape
    H = params["w_hh"].shape[0]
    Bp = max(8, ((B + 7) // 8) * 8)        # fill sublanes; padded rows are discarded

    # Pack every weight / bias into one lane-dense operand -> 2 DMA descriptors total.
    W = jnp.zeros((_W_ROWS, H_PAD), jnp.float32)
    W = W.at[_OFF_IH:_OFF_IH + I, :H].set(params["w_ih"].T)          # (I, H)
    W = W.at[_OFF_HH:_OFF_HH + H, :H].set(params["w_hh"].T)          # (H, H)
    W = W.at[_OFF_B, :H].set(params["b_ih"] + params["b_hh"])        # fused rnn bias
    W = W.at[_OFF_FC, :H].set(params["w_fc"][0])                     # output_size == 1
    W = W.at[_OFF_BFC, 0].set(params["b_fc"][0])

    # Time-major, batch padded to a sublane multiple; final reshape is a free
    # row-major metadata op, so the kernel sees a plain 2-D contiguous array.
    x_pad = jnp.pad(x, ((0, Bp - B), (0, 0), (0, 0)))
    x2 = jnp.transpose(x_pad, (1, 0, 2)).reshape(T * Bp, I)

    kernel = functools.partial(_rnn_kernel, T=T, B=Bp, I=I)
    vmem = pl.BlockSpec(memory_space=pltpu.MemorySpace.VMEM)
    out = pl.pallas_call(
        kernel,
        out_shape=jax.ShapeDtypeStruct((Bp, OUTPUT_SIZE), jnp.float32),
        in_specs=[vmem, vmem],
        out_specs=vmem,
        compiler_params=pltpu.CompilerParams(
            vmem_limit_bytes=32 * 1024 * 1024),
    )(x2, W)
    return out[:B]


def _reference(x, params):
    B, T, I = x.shape
    H = params["w_ih"].shape[0]
    P = jax.lax.Precision.HIGHEST
    h = jnp.zeros((B, H), jnp.float32)
    for t in range(T):
        h = jnp.tanh(jnp.dot(x[:, t, :], params["w_ih"].T, precision=P)
                     + params["b_ih"]
                     + jnp.dot(h, params["w_hh"].T, precision=P)
                     + params["b_hh"])
    return jnp.dot(h, params["w_fc"].T, precision=P) + params["b_fc"]


def init_params(key, input_size=INPUT_SIZE, hidden_size=HIDDEN_SIZE,
                output_size=OUTPUT_SIZE):
    # Deterministic init mimicking PyTorch defaults: U(-1/sqrt(H), 1/sqrt(H)).
    ks = jax.random.split(key, 6)
    bound = 1.0 / jnp.sqrt(hidden_size)
    u = lambda k, shape, b: jax.random.uniform(k, shape, jnp.float32, -b, b)
    return {
        "w_ih": u(ks[0], (hidden_size, input_size), bound),
        "w_hh": u(ks[1], (hidden_size, hidden_size), bound),
        "b_ih": u(ks[2], (hidden_size,), bound),
        "b_hh": u(ks[3], (hidden_size,), bound),
        "w_fc": u(ks[4], (output_size, hidden_size), bound),
        "b_fc": u(ks[5], (output_size,), bound),
    }


if __name__ == "__main__":
    key = jax.random.PRNGKey(0)
    k_x, k_p = jax.random.split(key)

    B, T = 2, 8
    x = jax.random.normal(k_x, (B, T, INPUT_SIZE), jnp.float32)
    params = init_params(k_p)

    out = jax.block_until_ready(rnn_forward(x, params))

    ref = _reference(x, params)
    assert out.shape == (B, OUTPUT_SIZE)
    assert jnp.allclose(out, ref, atol=2e-5, rtol=2e-5)
    print("KERNEL_OK")
</pallas_src>

<mosaic_0001>
module attributes {stable_mosaic.version = 11 : i64} {
  func.func @_rnn_kernel(%arg0: memref<64x11xf32, #tpu.memory_space<vmem>>, %arg1: memref<168x128xf32, #tpu.memory_space<vmem>>, %arg2: memref<8x1xf32, #tpu.memory_space<vmem>>) attributes {dimension_semantics = [], scalar_prefetch = 0 : i64, scratch_operands = 0 : i64, tpu.core_type = #tpu.core_type<tc>} {
    %c0 = arith.constant 0 : index
    %c0_0 = arith.constant 0 : index
    %0 = vector.load %arg1[%c0, %c0_0] : memref<168x128xf32, #tpu.memory_space<vmem>>, vector<11x128xf32>
    %c16 = arith.constant 16 : index
    %c0_1 = arith.constant 0 : index
    %1 = vector.load %arg1[%c16, %c0_1] : memref<168x128xf32, #tpu.memory_space<vmem>>, vector<128x128xf32>
    %c144 = arith.constant 144 : index
    %c0_2 = arith.constant 0 : index
    %2 = vector.load %arg1[%c144, %c0_2] : memref<168x128xf32, #tpu.memory_space<vmem>>, vector<1x128xf32>
    %c152 = arith.constant 152 : index
    %c0_3 = arith.constant 0 : index
    %3 = vector.load %arg1[%c152, %c0_3] : memref<168x128xf32, #tpu.memory_space<vmem>>, vector<1x128xf32>
    %c160 = arith.constant 160 : index
    %c0_4 = arith.constant 0 : index
    %4 = vector.load %arg1[%c160, %c0_4] : memref<168x128xf32, #tpu.memory_space<vmem>>, vector<1x1xf32>
    %c0_5 = arith.constant 0 : index
    %c0_6 = arith.constant 0 : index
    %5 = vector.load %arg0[%c0_5, %c0_6] : memref<64x11xf32, #tpu.memory_space<vmem>>, vector<64x11xf32>
    %cst = arith.constant dense<0.000000e+00> : vector<64x128xf32>
    %6 = tpu.matmul %5, %0, %cst {dimension_numbers = #tpu.dot_dimension_numbers<[1], [0], [0], [1], [0, 0, 1, 1], [], []>, precision = #tpu.contract_precision<fp32>} : vector<64x11xf32>, vector<11x128xf32>, vector<64x128xf32> -> vector<64x128xf32>
    %7 = vector.broadcast %2 : vector<1x128xf32> to vector<64x128xf32>
    %8 = arith.addf %6, %7 : vector<64x128xf32>
    %cst_7 = arith.constant 0.000000e+00 : f32
    %9 = vector.broadcast %cst_7 : f32 to vector<8x128xf32>
    %10 = vector.extract_strided_slice %8 {offsets = [0, 0], sizes = [8, 128], strides = [1, 1]} : vector<64x128xf32> to vector<8x128xf32>
    %cst_8 = arith.constant dense<0.000000e+00> : vector<8x128xf32>
    %11 = tpu.matmul %9, %1, %cst_8 {dimension_numbers = #tpu.dot_dimension_numbers<[1], [0], [0], [1], [0, 0, 1, 1], [], []>, precision = #tpu.contract_precision<fp32>} : vector<8x128xf32>, vector<128x128xf32>, vector<8x128xf32> -> vector<8x128xf32>
    %12 = arith.addf %10, %11 : vector<8x128xf32>
    %13 = math.tanh %12 : vector<8x128xf32>
    %14 = vector.extract_strided_slice %8 {offsets = [8, 0], sizes = [8, 128], strides = [1, 1]} : vector<64x128xf32> to vector<8x128xf32>
    %cst_9 = arith.constant dense<0.000000e+00> : vector<8x128xf32>
    %15 = tpu.matmul %13, %1, %cst_9 {dimension_numbers = #tpu.dot_dimension_numbers<[1], [0], [0], [1], [0, 0, 1, 1], [], []>, precision = #tpu.contract_precision<fp32>} : vector<8x128xf32>, vector<128x128xf32>, vector<8x128xf32> -> vector<8x128xf32>
    %16 = arith.addf %14, %15 : vector<8x128xf32>
    %17 = math.tanh %16 : vector<8x128xf32>
    %18 = vector.extract_strided_slice %8 {offsets = [16, 0], sizes = [8, 128], strides = [1, 1]} : vector<64x128xf32> to vector<8x128xf32>
    %cst_10 = arith.constant dense<0.000000e+00> : vector<8x128xf32>
    %19 = tpu.matmul %17, %1, %cst_10 {dimension_numbers = #tpu.dot_dimension_numbers<[1], [0], [0], [1], [0, 0, 1, 1], [], []>, precision = #tpu.contract_precision<fp32>} : vector<8x128xf32>, vector<128x128xf32>, vector<8x128xf32> -> vector<8x128xf32>
    %20 = arith.addf %18, %19 : vector<8x128xf32>
    %21 = math.tanh %20 : vector<8x128xf32>
    %22 = vector.extract_strided_slice %8 {offsets = [24, 0], sizes = [8, 128], strides = [1, 1]} : vector<64x128xf32> to vector<8x128xf32>
    %cst_11 = arith.constant dense<0.000000e+00> : vector<8x128xf32>
    %23 = tpu.matmul %21, %1, %cst_11 {dimension_numbers = #tpu.dot_dimension_numbers<[1], [0], [0], [1], [0, 0, 1, 1], [], []>, precision = #tpu.contract_precision<fp32>} : vector<8x128xf32>, vector<128x128xf32>, vector<8x128xf32> -> vector<8x128xf32>
    %24 = arith.addf %22, %23 : vector<8x128xf32>
    %25 = math.tanh %24 : vector<8x128xf32>
    %26 = vector.extract_strided_slice %8 {offsets = [32, 0], sizes = [8, 128], strides = [1, 1]} : vector<64x128xf32> to vector<8x128xf32>
    %cst_12 = arith.constant dense<0.000000e+00> : vector<8x128xf32>
    %27 = tpu.matmul %25, %1, %cst_12 {dimension_numbers = #tpu.dot_dimension_numbers<[1], [0], [0], [1], [0, 0, 1, 1], [], []>, precision = #tpu.contract_precision<fp32>} : vector<8x128xf32>, vector<128x128xf32>, vector<8x128xf32> -> vector<8x128xf32>
    %28 = arith.addf %26, %27 : vector<8x128xf32>
    %29 = math.tanh %28 : vector<8x128xf32>
    %30 = vector.extract_strided_slice %8 {offsets = [40, 0], sizes = [8, 128], strides = [1, 1]} : vector<64x128xf32> to vector<8x128xf32>
    %cst_13 = arith.constant dense<0.000000e+00> : vector<8x128xf32>
    %31 = tpu.matmul %29, %1, %cst_13 {dimension_numbers = #tpu.dot_dimension_numbers<[1], [0], [0], [1], [0, 0, 1, 1], [], []>, precision = #tpu.contract_precision<fp32>} : vector<8x128xf32>, vector<128x128xf32>, vector<8x128xf32> -> vector<8x128xf32>
    %32 = arith.addf %30, %31 : vector<8x128xf32>
    %33 = math.tanh %32 : vector<8x128xf32>
    %34 = vector.extract_strided_slice %8 {offsets = [48, 0], sizes = [8, 128], strides = [1, 1]} : vector<64x128xf32> to vector<8x128xf32>
    %cst_14 = arith.constant dense<0.000000e+00> : vector<8x128xf32>
    %35 = tpu.matmul %33, %1, %cst_14 {dimension_numbers = #tpu.dot_dimension_numbers<[1], [0], [0], [1], [0, 0, 1, 1], [], []>, precision = #tpu.contract_precision<fp32>} : vector<8x128xf32>, vector<128x128xf32>, vector<8x128xf32> -> vector<8x128xf32>
    %36 = arith.addf %34, %35 : vector<8x128xf32>
    %37 = math.tanh %36 : vector<8x128xf32>
    %38 = vector.extract_strided_slice %8 {offsets = [56, 0], sizes = [8, 128], strides = [1, 1]} : vector<64x128xf32> to vector<8x128xf32>
    %cst_15 = arith.constant dense<0.000000e+00> : vector<8x128xf32>
    %39 = tpu.matmul %37, %1, %cst_15 {dimension_numbers = #tpu.dot_dimension_numbers<[1], [0], [0], [1], [0, 0, 1, 1], [], []>, precision = #tpu.contract_precision<fp32>} : vector<8x128xf32>, vector<128x128xf32>, vector<8x128xf32> -> vector<8x128xf32>
    %40 = arith.addf %38, %39 : vector<8x128xf32>
    %41 = math.tanh %40 : vector<8x128xf32>
    %42 = vector.broadcast %3 : vector<1x128xf32> to vector<8x128xf32>
    %43 = arith.mulf %41, %42 : vector<8x128xf32>
    %cst_16 = arith.constant dense<0.000000e+00> : vector<8xf32>
    %44 = vector.multi_reduction <add>, %43, %cst_16 [1] : vector<8x128xf32> to vector<8xf32>
    %45 = vector.shape_cast %44 : vector<8xf32> to vector<8x1xf32>
    %46 = vector.broadcast %4 : vector<1x1xf32> to vector<8x1xf32>
    %47 = arith.addf %45, %46 : vector<8x1xf32>
    %c0_17 = arith.constant 0 : index
    %c0_18 = arith.constant 0 : index
    %48 = vector.load %arg2[%c0_17, %c0_18] : memref<8x1xf32, #tpu.memory_space<vmem>>, vector<8x1xf32>
    tpu.vector_store %arg2[%c0_17, %c0_18], %47 {strides = array<i32>} : memref<8x1xf32, #tpu.memory_space<vmem>>, vector<8x1xf32>,
    return
  }
}

</mosaic_0001>

<bundles_post_ra>
// kernel: rnn_forward.1
= control target key start
LH: loop header
LB: loop body
LE: loop exit
PB: predicated region body
PF: predicated region fallthrough
CT: control target
= control target key end

     0   :  { %vm69_vm0 = vcmask 1042432   ;;  %vm44_vm1 = vcmask 89088   ;;  %v11388_v19 = vmov 0.0|0.0   ;;  %vm9960_vm2 = vmmov 0   ;;  %s11373_s1 = inlined_call_operand.vmem [shape: f32[168,128], index: 1, kind: input, shape index: {}]   ;;  %s11374_s0 = inlined_call_operand.vmem [shape: f32[64,11], index: 0, kind: input, shape index: {}]   ;;  %s11375_s2 = inlined_call_operand.vmem [shape: f32[8,1], index: 2, kind: output, shape index: {}]  }
   0x1   :  { %v11_v0 = vld [vmem:[%s11373_s1] sm:$0xff]  ;;  %v12_v1 = vld [vmem:[%s11373_s1 + $0x8] sm:$0x7]  ;;  %v9986_v4 = vld [vmem:[%s11373_s1 + $0x10] sm:$0xff]  ;;  %vm5976_vm3 = vcmask 7168  }
   0x2   :  { %v71_v2 = vsel %vm69_vm0, %v12_v1, 0  ;;  %v74_v3 = vand.u32 4294901760, %v11_v0  ;;  %v9991_v5 = vld [vmem:[%s11373_s1 + $0x18] sm:$0xff]  ;;  %v10000_v9 = vld [vmem:[%s11373_s1 + $0x20] sm:$0xff]  ;;  %v834_v10 = vand.u32 4294901760, %v9986_v4  ;;  %v10007_v12 = vld [vmem:[%s11373_s1 + $0x28] sm:$0xff] }
   0x3   :  { %v77_v6 = vand.u32 4294901760, %v71_v2  ;;  %v837_v11 = vand.u32 4294901760, %v9991_v5  ;;  %v32_v13 = vld [vmem:[%s11374_s0] sm:$0xff]  ;;  %v33_v14 = vld [vmem:[%s11374_s0 + $0x8] sm:$0xff]  ;;  %v34_v15 = vld [vmem:[%s11374_s0 + $0x10] sm:$0xff]  ;;  %v840_v17 = vand.u32 4294901760, %v10000_v9 }
   0x4   :  { %v9995_v8 = vsub.f32 %v11_v0, %v74_v3  ;;  %v35_v16 = vld [vmem:[%s11374_s0 + $0x18] sm:$0xff]  ;;  %v46_v18 = vsel %vm44_vm1, %v32_v13, 0  ;;  %v49_v20 = vsel %vm44_vm1, %v33_v14, 0  ;;  %v843_v23 = vand.u32 4294901760, %v10007_v12  ;;  %v36_v26 = vld [vmem:[%s11374_s0 + $0x20] sm:$0xff]  ;;  %v37_v27 = vld [vmem:[%s11374_s0 + $0x28] sm:$0xff] }
   0x5   :  { %v9993_v7 = vpack.c.bf16 %v77_v6, %v74_v3  ;;  %v10032_v22 = vpack.c.bf16 %v837_v11, %v834_v10  ;;  %v10035_v24 = vand.u32 4294901760, %v46_v18  ;;  %v10037_v25 = vand.u32 4294901760, %v49_v20  ;;  %v38_v36 = vld [vmem:[%s11374_s0 + $0x30] sm:$0xff]  ;;  %v39_v37 = vld [vmem:[%s11374_s0 + $0x38] sm:$0xff] }
   0x6   :  { %v11387_v21 = vand.u32 4294901760, %v9995_v8  ;;  %v10048_v29 = vsub.f32 %v71_v2, %v77_v6  ;;  %v52_v30 = vsel %vm44_vm1, %v34_v15, 0  ;;  %v55_v31 = vsel %vm44_vm1, %v35_v16, 0  ;;  %v10113_v62 = vld [vmem:[%s11373_s1 + $0x30] sm:$0xff]  ;;  %v10118_v63 = vld [vmem:[%s11373_s1 + $0x38] sm:$0xff] }
   0x7   :  { %8638 = vmatprep.subr.bf16.mxu1 %v9993_v7  ;;  %v10053_v32 = vsub.f32 %v46_v18, %v10035_v24  ;;  %v10056_v33 = vsub.f32 %v49_v20, %v10037_v25  ;;  %6881 = vmatprep.mubr.f32.mxu0 %v10035_v24  ;;  %v10059_v34 = vand.u32 4294901760, %v52_v30  ;;  %v10061_v35 = vand.u32 4294901760, %v55_v31 }
   0x8   :  { %8640 = vmatpush3.bf16.msra.mxu1 %v9993_v7  ;;  %v224_v28 = vsub.f32 %v9995_v8, %v11387_v21  ;;  %v11384_v39 = vand.u32 4294901760, %v10048_v29  ;;  %v58_v40 = vsel %vm44_vm1, %v36_v26, 0  ;;  %v61_v41 = vsel %vm44_vm1, %v37_v27, 0 }
   0x9   :  { %8661 = vmatprep.subr.bf16.mxu1 %v11388_v19  ;;  %v11383_v42 = vand.u32 4294901760, %v10053_v32  ;;  %v11382_v43 = vand.u32 4294901760, %v10056_v33  ;;  %v10074_v44 = vand.u32 4294901760, %v58_v40  ;;  %v10076_v45 = vand.u32 4294901760, %v61_v41 }
   0xa   :  { %v225_v38 = vand.u32 4294901760, %v224_v28  ;;  %v231_v46 = vsub.f32 %v10048_v29, %v11384_v39  ;;  %v64_v47 = vsel %vm44_vm1, %v38_v36, 0  ;;  %v67_v48 = vsel %vm44_vm1, %v39_v37, 0  ;;  %v10149_v28 = vld [vmem:[%s11373_s1 + $0x40] sm:$0xff] }
   0xb   :  { %v8645_v49 = vpack.c.bf16 %v10048_v29, %v9995_v8  ;;  %v143_v50 = vsub.f32 %v10053_v32, %v11383_v42  ;;  %v153_v51 = vsub.f32 %v10056_v33, %v11382_v43  ;;  %v10091_v52 = vand.u32 4294901760, %v64_v47 }
   0xc   :  { %v10093_v53 = vand.u32 4294901760, %v67_v48  ;;  %v232_v54 = vand.u32 4294901760, %v231_v46  ;;  %v10096_v55 = vsub.f32 %v52_v30, %v10059_v34  ;;  %v10099_v56 = vsub.f32 %v55_v31, %v10061_v35  ;;  %v10154_v30 = vld [vmem:[%s11373_s1 + $0x48] sm:$0xff] }
   0xd   :  { %v10102_v57 = vsub.f32 %v58_v40, %v10074_v44  ;;  %v144_v58 = vand.u32 4294901760, %v143_v50  ;;  %v154_v59 = vand.u32 4294901760, %v153_v51  ;;  %v10105_v60 = vsub.f32 %v61_v41, %v10076_v45  ;;  %v21_v50 = vld [vmem:[%s11373_s1 + $0x50] sm:$0xff]  ;;  %v22_v51 = vld [vmem:[%s11373_s1 + $0x58] sm:$0xff] }
   0xe   :  { %v10108_v61 = vsub.f32 %v64_v47, %v10091_v52  ;;  %v8641_v0 = vpack.c.bf16 %v232_v54, %v225_v38  ;;  %v11381_v1 = vand.u32 4294901760, %v10096_v55  ;;  %v11380_v2 = vand.u32 4294901760, %v10099_v56  ;;  %v23_v54 = vld [vmem:[%s11373_s1 + $0x60] sm:$0xff] }
   0xf   :  { %v11379_v3 = vand.u32 4294901760, %v10102_v57  ;;  %6865 = vmatprep.mubr.f32.mxu1 %v144_v58  ;;  %v11378_v6 = vand.u32 4294901760, %v10105_v60  ;;  %v10125_v13 = vsub.f32 %v67_v48, %v10093_v53  ;;  %v10141_v20 = vpack.c.bf16 %v843_v23, %v840_v17  ;;  %v24_v58 = vld [vmem:[%s11373_s1 + $0x68] sm:$0xff] }
  0x10   :  { %6866 = vmatmul.mubr.f32.vlgmr.msra.gmra.mrb[0].mxu1 %v154_v59  ;;  %8642 = vmatprep.subr.bf16.mxu0 %v8641_v0  ;;  %v163_v14 = vsub.f32 %v10096_v55, %v11381_v1  ;;  %v173_v15 = vsub.f32 %v10099_v56, %v11380_v2  ;;  %v11377_v18 = vand.u32 4294901760, %v10108_v61  ;;  %v846_v26 = vand.u32 4294901760, %v10113_v62  ;;  %v25_v59 = vld [vmem:[%s11373_s1 + $0x70] sm:$0xff] }
  0x11   :  { %v183_v16 = vsub.f32 %v10102_v57, %v11379_v3  ;;  %11403 = vst [vmem:[#allocation2_spill] sm:$0xff] %v10141_v20  ;;  %v849_v27 = vand.u32 4294901760, %v10118_v63  ;;  %8663 = vmatpush3.bf16.msra.mxu1 %v10032_v22  ;;  %8644 = vmatpush3.bf16.msra.mxu0 %v8641_v0  ;;  %v193_v37 = vsub.f32 %v10105_v60, %v11378_v6  ;;  %v11376_v38 = vand.u32 4294901760, %v10125_v13  ;;  %v26_v0 = vld [vmem:[%s11373_s1 + $0x78] sm:$0xff] }
  0x12   :  { %8664 = vmatprep.subr.bf16.mxu1 %v11388_v19  ;;  %8646 = vmatprep.subr.bf16.mxu0 %v8645_v49  ;;  %v164_v31 = vand.u32 4294901760, %v163_v14  ;;  %v174_v36 = vand.u32 4294901760, %v173_v15  ;;  %v203_v41 = vsub.f32 %v10108_v61, %v11377_v18  ;;  %v852_v47 = vand.u32 4294901760, %v10149_v28 }
  0x13   :  { %v184_v40 = vand.u32 4294901760, %v183_v16  ;;  %v10169_v46 = vpack.c.bf16 %v849_v27, %v846_v26  ;;  %v855_v48 = vand.u32 4294901760, %v10154_v30  ;;  %v194_v14 = vand.u32 4294901760, %v193_v37  ;;  %v27_v16 = vld [vmem:[%s11373_s1 + $0x80] sm:$0xff] }
  0x14   :  { %6882 = vmatmul.mubr.f32.vlgmr.msra.gmra.mrb[0].mxu0 %v10037_v25  ;;  %6868 = vmatprep.mubr.f32.mxu1 %v164_v31  ;;  %v213_v15 = vsub.f32 %v10125_v13, %v11376_v38  ;;  %v28_v31 = vld [vmem:[%s11373_s1 + $0x88] sm:$0xff]  ;;  %v858_v38 = vand.u32 4294901760, %v21_v50  ;;  %v861_v18 = vand.u32 4294901760, %v22_v51  ;;  %v870_v6 = vand.u32 4294901760, %v25_v59 }
  0x15   :  { %11404 = vst [vmem:[#allocation3_spill] sm:$0xff] %v10169_v46  ;;  %8666 = vmatpush3.bf16.msra.mxu1 %v10141_v20  ;;  %6884 = vmatprep.mubr.f32.mxu0 %v10059_v34  ;;  %v10210_v37 = vpack.c.bf16 %v855_v48, %v852_v47  ;;  %v873_v3 = vand.u32 4294901760, %v26_v0  ;;  %v876_v2 = vand.u32 4294901760, %v27_v16  ;;  %v879_v1 = vand.u32 4294901760, %v28_v31 }
  0x16   :  { %8667 = vmatprep.subr.bf16.mxu1 %v11388_v19  ;;  %8648 = vmatpush3.bf16.msra.mxu0 %v8645_v49  ;;  %v10200_v49 = vsub.f32 %v9986_v4, %v834_v10  ;;  %v864_v4 = vand.u32 4294901760, %v23_v54  ;;  %v867_v10 = vand.u32 4294901760, %v24_v58  ;;  %v214_v43 = vand.u32 4294901760, %v213_v15 }
  0x17   :  { %6869 = vmatmul.mubr.f32.gmra.mrb[2].mxu1 %v174_v36  ;;  %8650 = vmatprep.subr.bf16.mxu0 %v9993_v7  ;;  %v204_v36 = vand.u32 4294901760, %v203_v41  ;;  %11405 = vst [vmem:[#allocation4_spill] sm:$0xff] %v10210_v37  ;;  %v10220_v41 = vsub.f32 %v9991_v5, %v837_v11  ;;  %v10222_v42 = vpack.c.bf16 %v861_v18, %v858_v38 }
  0x18   :  { %6885 = vmatmul.mubr.f32.gmra.mrb[2].mxu0 %v10061_v35  ;;  %6871 = vmatprep.mubr.f32.mxu1 %v184_v40  ;;  %v922_v40 = vand.u32 4294901760, %v10200_v49  ;;  %v10234_v15 = vsub.f32 %v10007_v12, %v843_v23  ;;  %v10237_v5 = vpack.c.bf16 %v867_v10, %v864_v4  ;;  %v10239_v11 = vpack.c.bf16 %v873_v3, %v870_v6 }
  0x19   :  { %8669 = vmatpush3.bf16.msra.mxu1 %v10169_v46  ;;  %6887 = vmatprep.mubr.f32.mxu0 %v10074_v44  ;;  %11406 = vst [vmem:[#allocation5_spill] sm:$0xff] %v10222_v42  ;;  %v929_v12 = vand.u32 4294901760, %v10220_v41  ;;  %v10258_v23 = vsub.f32 %v10118_v63, %v849_v27  ;;  %v10273_v63 = vsub.f32 %v22_v51, %v861_v18  ;;  %v11409_v27 = vand.u32 4294901760, %v9995_v8 }
  0x1a   :  { %8670 = vmatprep.subr.bf16.mxu1 %v11388_v19  ;;  %11407 = vst [vmem:[#allocation6_spill] sm:$0xff] %v10237_v5  ;;  %v10244_v39 = vsub.f32 %v10200_v49, %v922_v40  ;;  %v943_v21 = vand.u32 4294901760, %v10234_v15  ;;  %v10285_v46 = vsub.f32 %v25_v59, %v870_v6 }
  0x1b   :  { %6872 = vmatmul.mubr.f32.gmra.mrb[4].mxu1 %v194_v14  ;;  %v10229_v14 = vsub.f32 %v10000_v9, %v840_v17  ;;  %v11385_v9 = vmov 0.0   ;;  %v10253_v17 = vsub.f32 %v10113_v62, %v846_v26  ;;  %v10270_v62 = vsub.f32 %v21_v50, %v858_v38 }
  0x1c   :  { %6888 = vmatmul.mubr.f32.gmra.mrb[4].mxu0 %v10076_v45  ;;  %6874 = vmatprep.mubr.f32.mxu1 %v204_v36  ;;  %v10241_v36 = vpack.c.bf16 %v879_v1, %v876_v2  ;;  %v11408_v26 = vmov 0.0|0.0   ;;  %v10289_v38 = vsub.f32 %v27_v16, %v876_v2  ;;  %v924_v8 = vand.u32 4294901760, %v10244_v39 }
  0x1d   :  { %8672 = vmatpush3.bf16.msra.mxu1 %v10210_v37  ;;  %6890 = vmatprep.mubr.f32.mxu0 %v10091_v52  ;;  %v10283_v37 = vsub.f32 %v24_v58, %v867_v10  ;;  %v950_v18 = vand.u32 4294901760, %v10253_v17  ;;  %v957_v50 = vand.u32 4294901760, %v10258_v23  ;;  %v944_v2 = vsub.f32 %v10234_v15, %v943_v21 }
  0x1e   :  { %8673 = vmatprep.subr.bf16.mxu1 %v11388_v19  ;;  %v10268_v19 = vsub.f32 %v10154_v30, %v855_v48  ;;  %v10287_v30 = vsub.f32 %v26_v0, %v873_v3  ;;  %v10291_v48 = vsub.f32 %v28_v31, %v879_v1  ;;  %v978_v39 = vand.u32 4294901760, %v10270_v62 }
  0x1f   :  { %6875 = vmatmul.mubr.f32.gmra.mrb[6].mxu1 %v214_v43  ;;  %v10261_v43 = vsub.f32 %v10149_v28, %v852_v47  ;;  %v11410_v28 = vand.u32 4294901760, %v10048_v29  ;;  %v930_v29 = vsub.f32 %v10220_v41, %v929_v12  ;;  %v985_v51 = vand.u32 4294901760, %v10273_v63 }
  0x20   :  { %6891 = vmatmul.mubr.f32.gmra.mrb[6].mxu0 %v10093_v53  ;;  %6989 = vmatprep.mubr.msk.f32.mxu1 %vm9960_vm2, %v11385_v9  ;;  %v936_v9 = vand.u32 4294901760, %v10229_v14  ;;  %v971_v6 = vand.u32 4294901760, %v10268_v19  ;;  %v999_v58 = vand.u32 4294901760, %v10283_v37  ;;  %v1006_v59 = vand.u32 4294901760, %v10285_v46 }
  0x21   :  { %8675 = vmatpush3.bf16.msra.mxu1 %v10222_v42  ;;  %6897 = vmatprep.mubr.f32.mxu0 %v10053_v32  ;;  %v10279_v47 = vpack.c.bf16 %v11410_v28, %v11409_v27  ;;  %v10281_v42 = vsub.f32 %v23_v54, %v864_v4  ;;  %v964_v1 = vand.u32 4294901760, %v10261_v43  ;;  %v10316_v4 = vpack.c.bf16 %v929_v12, %v922_v40 }
  0x22   :  { %8676 = vmatprep.subr.bf16.mxu1 %v11408_v26  ;;  %v937_v3 = vsub.f32 %v10229_v14, %v936_v9  ;;  %v10318_v10 = vpack.c.bf16 %v943_v21, %v936_v9  ;;  %v10320_v27 = vpack.c.bf16 %v957_v50, %v950_v18  ;;  %v10326_v0 = vpack.c.bf16 %v985_v51, %v978_v39 }
  0x23   :  { %v992_v54 = vand.u32 4294901760, %v10281_v42  ;;  %v10322_v28 = vpack.c.bf16 %v971_v6, %v964_v1  ;;  %v11413_v31 = vand.u32 4294901760, %v10287_v30  ;;  %v11415_v21 = vand.u32 4294901760, %v10289_v38 }
  0x24   :  { %6898 = vmatmul.mubr.f32.vlgmr.msra.gmra.mrb[0].mxu0 %v10056_v33  ;;  %11411 = vst [vmem:[#allocation7_spill] sm:$0xff] %v10326_v0  ;;  %v11416_v40 = vand.u32 4294901760, %v10291_v48  ;;  %v951_v12 = vsub.f32 %v10253_v17, %v950_v18  ;;  %v11417_v0 = vmov 0.0   ;;  %v11418_v18 = vand.u32 4294901760, %v10053_v32 }
  0x25   :  { %8678 = vmatpush3.bf16.msra.mxu1 %v10237_v5  ;;  %6900 = vmatprep.mubr.f32.mxu0 %v10096_v55  ;;  %v931_v5 = vand.u32 4294901760, %v930_v29  ;;  %v10328_v16 = vpack.c.bf16 %v999_v58, %v992_v54  ;;  %v10332_v20 = vpack.c.bf16 %v11413_v31, %v1006_v59  ;;  %v938_v31 = vand.u32 4294901760, %v937_v3 }
  0x26   :  { %8679 = vmatprep.subr.bf16.mxu1 %v11408_v26  ;;  %8652 = vmatpush3.bf16.msra.mxu0 %v9993_v7  ;;  %v10339_v9 = vpack.c.bf16 %v11416_v40, %v11415_v21  ;;  %v965_v21 = vsub.f32 %v10261_v43, %v964_v1  ;;  %v972_v3 = vsub.f32 %v10268_v19, %v971_v6  ;;  %v11420_v32 = vand.u32 4294901760, %v10096_v55 }
  0x27   :  { %8654 = vmatprep.subr.bf16.mxu0 %v10279_v47  ;;  %11412 = vst [vmem:[#allocation8_spill] sm:$0xff] %v10328_v16  ;;  %11414 = vst [vmem:[#allocation9_spill] sm:$0xff] %v10332_v20  ;;  %v10345_v29 = vpack.c.bf16 %v931_v5, %v924_v8  ;;  %v945_v20 = vand.u32 4294901760, %v944_v2  ;;  %v958_v16 = vsub.f32 %v10258_v23, %v957_v50  ;;  %v952_v5 = vand.u32 4294901760, %v951_v12 }
  0x28   :  { %6901 = vmatmul.mubr.f32.gmra.mrb[2].mxu0 %v10099_v56  ;;  %v11419_v50 = vand.u32 4294901760, %v10056_v33  ;;  %v979_v2 = vsub.f32 %v10270_v62, %v978_v39  ;;  %v966_v1 = vand.u32 4294901760, %v965_v21  ;;  %v986_v6 = vsub.f32 %v10273_v63, %v985_v51 }
  0x29   :  { %8681 = vmatpush3.bf16.msra.mxu1 %v10239_v11  ;;  %6903 = vmatprep.mubr.f32.mxu0 %v10102_v57  ;;  %v10355_v40 = vpack.c.bf16 %v945_v20, %v938_v31  ;;  %v959_v8 = vand.u32 4294901760, %v958_v16  ;;  %v973_v16 = vand.u32 4294901760, %v972_v3  ;;  %v11421_v33 = vand.u32 4294901760, %v10099_v56 }
  0x2a   :  { %8682 = vmatprep.subr.bf16.mxu1 %v11408_v26  ;;  %v980_v39 = vand.u32 4294901760, %v979_v2  ;;  %v11422_v55 = vand.u32 4294901760, %v10102_v57  ;;  %v987_v31 = vand.u32 4294901760, %v986_v6  ;;  %v993_v51 = vsub.f32 %v10281_v42, %v992_v54 }
  0x2b   :  { %v10367_v20 = vpack.c.bf16 %v959_v8, %v952_v5  ;;  %v10378_v12 = vpack.c.bf16 %v973_v16, %v966_v1  ;;  %v1000_v21 = vsub.f32 %v10283_v37, %v999_v58  ;;  %v1007_v56 = vsub.f32 %v10285_v46, %v1006_v59 }
  0x2c   :  { %6904 = vmatmul.mubr.f32.gmra.mrb[4].mxu0 %v10105_v60  ;;  %v10389_v57 = vpack.c.bf16 %v987_v31, %v980_v39  ;;  %v994_v5 = vand.u32 4294901760, %v993_v51  ;;  %v11425_v54 = vand.u32 4294901760, %v10287_v30  ;;  %v11427_v59 = vand.u32 4294901760, %v10289_v38 }
  0x2d   :  { %8684 = vmatpush3.bf16.msra.mxu1 %v10241_v36  ;;  %6906 = vmatprep.mubr.f32.mxu0 %v10108_v61  ;;  %v1001_v8 = vand.u32 4294901760, %v1000_v21  ;;  %v10436_v39 = vpack.c.bf16 %v10234_v15, %v10229_v14  ;;  %v5982_v14 = vld [vmem:[%s11373_s1 + $0x90] ss:$0 sm:$0xff] }
  0x2e   :  { %8685 = vmatprep.subr.bf16.mxu1 %v11408_v26  ;;  %v1014_v58 = vsub.f32 %v10287_v30, %v11425_v54  ;;  %v1021_v3 = vsub.f32 %v10289_v38, %v11427_v59 }
  0x30   :  { %6990 = vmatmul.mubr.f32.vlgmr.msra.gmra.mrb[8].mxu1 %v11417_v0  ;;  %6907 = vmatmul.mubr.f32.gmra.mrb[6].mxu0 %v10125_v13  ;;  %v1015_v2 = vand.u32 4294901760, %v1014_v58  ;;  %v1022_v16 = vand.u32 4294901760, %v1021_v3 }
  0x31   :  { %8687 = vmatpush3.bf16.msra.mxu1 %v10345_v29  ;;  %6913 = vmatprep.mubr.f32.mxu0 %v11418_v18  ;;  %v11424_v18 = vand.u32 4294901760, %v10108_v61  ;;  %v10402_v61 = vpack.c.bf16 %v1001_v8, %v994_v5 }
  0x32   :  { %8688 = vmatprep.subr.bf16.mxu1 %v11408_v26  ;;  %7024 = vmatprep.mubr.msk.f32.mxu1 %vm9960_vm2, %v11417_v0 }
  0x34   :  { %6914 = vmatmul.mubr.f32.vlgmr.msra.gmra.mrb[0].mxu0 %v11419_v50  ;;  %v1008_v50 = vand.u32 4294901760, %v1007_v56 }
  0x35   :  { %8690 = vmatpush3.bf16.msra.mxu1 %v10355_v40  ;;  %6916 = vmatprep.mubr.f32.mxu0 %v11420_v32  ;;  %v11428_v32 = vand.u32 4294901760, %v10291_v48 }
  0x36   :  { %8691 = vmatprep.subr.bf16.mxu1 %v11408_v26  ;;  %8656 = vmatpush3.bf16.msra.mxu0 %v10279_v47  ;;  %v11423_v47 = vand.u32 4294901760, %v10105_v60  ;;  %v11426_v60 = vand.u32 4294901760, %v10125_v13  ;;  %v10411_v13 = vpack.c.bf16 %v1015_v2, %v1008_v50 }
  0x37   :  { %8658 = vmatprep.subr.bf16.mxu0 %v9993_v7  ;;  %v1028_v1 = vsub.f32 %v10291_v48, %v11428_v32 }
  0x38   :  { %6917 = vmatmul.mubr.f32.gmra.mrb[2].mxu0 %v11421_v33 }
  0x39   :  { %8693 = vmatpush3.bf16.msra.mxu1 %v10367_v20  ;;  %6919 = vmatprep.mubr.f32.mxu0 %v11422_v55  ;;  %v1029_v6 = vand.u32 4294901760, %v1028_v1 }
  0x3a   :  { %8694 = vmatprep.subr.bf16.mxu1 %v11408_v26 }
  0x3b   :  { %v10419_v33 = vpack.c.bf16 %v1029_v6, %v1022_v16 }
  0x3c   :  { %6920 = vmatmul.mubr.f32.gmra.mrb[4].mxu0 %v11423_v47 }
  0x3d   :  { %8696 = vmatpush3.bf16.msra.mxu1 %v10378_v12  ;;  %6922 = vmatprep.mubr.f32.mxu0 %v11424_v18 }
  0x3e   :  { %8697 = vmatprep.subr.bf16.mxu1 %v11408_v26 }
  0x40   :  { %6923 = vmatmul.mubr.f32.gmra.mrb[6].mxu0 %v11426_v60 }
  0x41   :  { %8699 = vmatpush3.bf16.msra.mxu1 %v10389_v57  ;;  %6929 = vmatprep.mubr.f32.mxu0 %v10035_v24 }
  0x42   :  { %8700 = vmatprep.subr.bf16.mxu1 %v11408_v26 }
  0x44   :  { %6930 = vmatmul.mubr.f32.vlgmr.msra.gmra.mrb[0].mxu0 %v10037_v25 }
  0x45   :  { %8702 = vmatpush3.bf16.msra.mxu1 %v10402_v61  ;;  %6932 = vmatprep.mubr.f32.mxu0 %v10059_v34 }
  0x46   :  { %8703 = vmatprep.subr.bf16.mxu1 %v11408_v26  ;;  %8660 = vmatpush3.bf16.msra.mxu0 %v9993_v7  ;;  %v10427_v7 = vpack.c.bf16 %v10220_v41, %v10200_v49  ;;  %v10446_v49 = vpack.c.bf16 %v10258_v23, %v10253_v17  ;;  %v11436_v41 = vld [vmem:[#allocation9_spill] sm:$0xff] }
  0x47   :  { %8829 = vmatprep.subr.bf16.mxu0 %v11408_v26 }
  0x48   :  { %6933 = vmatmul.mubr.f32.gmra.mrb[2].mxu0 %v10061_v35 }
  0x49   :  { %8705 = vmatpush3.bf16.msra.mxu1 %v10411_v13  ;;  %6935 = vmatprep.mubr.f32.mxu0 %v10074_v44 }
  0x4a   :  { %8706 = vmatprep.subr.bf16.mxu1 %v11408_v26 }
  0x4c   :  { %6936 = vmatmul.mubr.f32.gmra.mrb[4].mxu0 %v10076_v45 }
  0x4d   :  { %8708 = vmatpush3.bf16.msra.mxu1 %v10419_v33  ;;  %6938 = vmatprep.mubr.f32.mxu0 %v10091_v52 }
  0x4e   :  { %8709 = vmatprep.subr.bf16.mxu1 %v11408_v26 }
  0x50   :  { %7025 = vmatmul.mubr.f32.vlgmr.msra.gmra.mrb[8].mxu1 %v11417_v0  ;;  %6939 = vmatmul.mubr.f32.gmra.mrb[6].mxu0 %v10093_v53 }
  0x51   :  { %8711 = vmatpush3.bf16.msra.mxu1 %v10427_v7  ;;  %6945 = vmatprep.mubr.f32.mxu0 %v10035_v24  ;;  %v10456_v24 = vpack.c.bf16 %v10268_v19, %v10261_v43  ;;  %v10475_v19 = vpack.c.bf16 %v10283_v37, %v10281_v42  ;;  %v11429_v42 = vld [vmem:[#allocation2_spill] sm:$0xff]  ;;  %v11435_v37 = vld [vmem:[#allocation8_spill] sm:$0xff] }
  0x52   :  { %8712 = vmatprep.subr.bf16.mxu1 %v11408_v26  ;;  %7059 = vmatprep.mubr.msk.f32.mxu1 %vm9960_vm2, %v11417_v0 }
  0x54   :  { %6946 = vmatmul.mubr.f32.vlgmr.msra.gmra.mrb[0].mxu0 %v10037_v25  ;;  %v10466_v25 = vpack.c.bf16 %v10273_v63, %v10270_v62 }
  0x55   :  { %8714 = vmatpush3.bf16.msra.mxu1 %v10436_v39  ;;  %6948 = vmatprep.mubr.f32.mxu0 %v10059_v34  ;;  %v10485_v34 = vpack.c.bf16 %v10287_v30, %v10285_v46  ;;  %v11434_v46 = vld [vmem:[#allocation7_spill] sm:$0xff] }
  0x56   :  { %8715 = vmatprep.subr.bf16.mxu1 %v11408_v26  ;;  %8831 = vmatpush3.bf16.msra.mxu0 %v10345_v29 }
  0x57   :  { %8832 = vmatprep.subr.bf16.mxu0 %v11408_v26 }
  0x58   :  { %6949 = vmatmul.mubr.f32.gmra.mrb[2].mxu0 %v10061_v35  ;;  %v10493_v35 = vpack.c.bf16 %v10291_v48, %v10289_v38 }
  0x59   :  { %8717 = vmatpush3.bf16.msra.mxu1 %v10446_v49  ;;  %6951 = vmatprep.mubr.f32.mxu0 %v10074_v44  ;;  %v11430_v44 = vld [vmem:[#allocation3_spill] sm:$0xff] }
  0x5a   :  { %8718 = vmatprep.subr.bf16.mxu1 %v11408_v26  ;;  %8834 = vmatpush3.bf16.msra.mxu0 %v10355_v40 }
  0x5b   :  { %8835 = vmatprep.subr.bf16.mxu0 %v11408_v26 }
  0x5c   :  { %6952 = vmatmul.mubr.f32.gmra.mrb[4].mxu0 %v10076_v45  ;;  %v11431_v45 = vld [vmem:[#allocation4_spill] sm:$0xff] }
  0x5d   :  { %8720 = vmatpush3.bf16.msra.mxu1 %v10456_v24  ;;  %6954 = vmatprep.mubr.f32.mxu0 %v10091_v52  ;;  %v11432_v52 = vld [vmem:[#allocation5_spill] sm:$0xff] }
  0x5e   :  { %8721 = vmatprep.subr.bf16.mxu1 %v11408_v26  ;;  %8837 = vmatpush3.bf16.msra.mxu0 %v10367_v20 }
  0x5f   :  { %8838 = vmatprep.subr.bf16.mxu0 %v11408_v26 }
  0x60   :  { %6955 = vmatmul.mubr.f32.gmra.mrb[6].mxu0 %v10093_v53  ;;  %v11433_v53 = vld [vmem:[#allocation6_spill] sm:$0xff] }
  0x61   :  { %8723 = vmatpush3.bf16.msra.mxu1 %v10466_v25  ;;  %7234 = vmatprep.mubr.msk.f32.mxu0 %vm9960_vm2, %v11417_v0 }
  0x62   :  { %8724 = vmatprep.subr.bf16.mxu1 %v11408_v26  ;;  %8840 = vmatpush3.bf16.msra.mxu0 %v10378_v12 }
  0x63   :  { %8841 = vmatprep.subr.bf16.mxu0 %v11408_v26 }
  0x65   :  { %8726 = vmatpush3.bf16.msra.mxu1 %v10475_v19 }
  0x66   :  { %8727 = vmatprep.subr.bf16.mxu1 %v11408_v26  ;;  %8843 = vmatpush3.bf16.msra.mxu0 %v10389_v57 }
  0x67   :  { %8844 = vmatprep.subr.bf16.mxu0 %v11408_v26 }
  0x69   :  { %8729 = vmatpush3.bf16.msra.mxu1 %v10485_v34 }
  0x6a   :  { %8730 = vmatprep.subr.bf16.mxu1 %v11408_v26  ;;  %8846 = vmatpush3.bf16.msra.mxu0 %v10402_v61 }
  0x6b   :  { %8847 = vmatprep.subr.bf16.mxu0 %v11408_v26 }
  0x6d   :  { %8732 = vmatpush3.bf16.msra.mxu1 %v10493_v35 }
  0x6e   :  { %8733 = vmatprep.subr.bf16.mxu1 %v11408_v26  ;;  %8849 = vmatpush3.bf16.msra.mxu0 %v10411_v13 }
  0x6f   :  { %8850 = vmatprep.subr.bf16.mxu0 %v11408_v26 }
  0x70   :  { %7060 = vmatmul.mubr.f32.vlgmr.msra.gmra.mrb[8].mxu1 %v11417_v0 }
  0x71   :  { %8735 = vmatpush3.bf16.msra.mxu1 %v10032_v22  ;;  %7094 = vmatprep.mubr.msk.f32.mxu1 %vm9960_vm2, %v11417_v0 }
  0x72   :  { %8736 = vmatprep.subr.bf16.mxu1 %v11408_v26  ;;  %8852 = vmatpush3.bf16.msra.mxu0 %v10419_v33 }
  0x73   :  { %8853 = vmatprep.subr.bf16.mxu0 %v11408_v26 }
  0x75   :  { %8738 = vmatpush3.bf16.msra.mxu1 %v11429_v42 }
  0x76   :  { %8739 = vmatprep.subr.bf16.mxu1 %v11408_v26 }
  0x79   :  { %8741 = vmatpush3.bf16.msra.mxu1 %v11430_v44 }
  0x7a   :  { %8742 = vmatprep.subr.bf16.mxu1 %v11408_v26 }
  0x7d   :  { %8744 = vmatpush3.bf16.msra.mxu1 %v11431_v45 }
  0x7e   :  { %8745 = vmatprep.subr.bf16.mxu1 %v11408_v26 }
  0x81   :  { %8747 = vmatpush3.bf16.msra.mxu1 %v11432_v52 }
  0x82   :  { %8748 = vmatprep.subr.bf16.mxu1 %v11408_v26 }
  0x85   :  { %8750 = vmatpush3.bf16.msra.mxu1 %v11433_v53 }
  0x86   :  { %8751 = vmatprep.subr.bf16.mxu1 %v11408_v26 }
  0x89   :  { %8753 = vmatpush3.bf16.msra.mxu1 %v10239_v11 }
  0x8a   :  { %8754 = vmatprep.subr.bf16.mxu1 %v11408_v26 }
  0x8d   :  { %8756 = vmatpush3.bf16.msra.mxu1 %v10241_v36 }
  0x8e   :  { %8757 = vmatprep.subr.bf16.mxu1 %v11408_v26 }
  0x90   :  { %7095 = vmatmul.mubr.f32.vlgmr.msra.gmra.mrb[8].mxu1 %v11417_v0 }
  0x91   :  { %8759 = vmatpush3.bf16.msra.mxu1 %v10316_v4  ;;  %7129 = vmatprep.mubr.msk.f32.mxu1 %vm9960_vm2, %v11417_v0 }
  0x92   :  { %8760 = vmatprep.subr.bf16.mxu1 %v11408_v26 }
  0x95   :  { %8762 = vmatpush3.bf16.msra.mxu1 %v10318_v10 }
  0x96   :  { %8763 = vmatprep.subr.bf16.mxu1 %v11408_v26 }
  0x99   :  { %8765 = vmatpush3.bf16.msra.mxu1 %v10320_v27 }
  0x9a   :  { %8766 = vmatprep.subr.bf16.mxu1 %v11408_v26 }
  0x9d   :  { %8768 = vmatpush3.bf16.msra.mxu1 %v10322_v28 }
  0x9e   :  { %8769 = vmatprep.subr.bf16.mxu1 %v11408_v26 }
  0xa1   :  { %8771 = vmatpush3.bf16.msra.mxu1 %v11434_v46 }
  0xa2   :  { %8772 = vmatprep.subr.bf16.mxu1 %v11408_v26 }
  0xa5   :  { %8774 = vmatpush3.bf16.msra.mxu1 %v11435_v37 }
  0xa6   :  { %8775 = vmatprep.subr.bf16.mxu1 %v11408_v26 }
  0xa9   :  { %8777 = vmatpush3.bf16.msra.mxu1 %v11436_v41 }
  0xaa   :  { %8778 = vmatprep.subr.bf16.mxu1 %v11408_v26 }
  0xad   :  { %8780 = vmatpush3.bf16.msra.mxu1 %v10339_v9 }
  0xae   :  { %8781 = vmatprep.subr.bf16.mxu1 %v11408_v26 }
  0xb0   :  { %7130 = vmatmul.mubr.f32.vlgmr.msra.gmra.mrb[8].mxu1 %v11417_v0 }
  0xb1   :  { %8783 = vmatpush3.bf16.msra.mxu1 %v10032_v22  ;;  %7164 = vmatprep.mubr.msk.f32.mxu1 %vm9960_vm2, %v11417_v0 }
  0xb2   :  { %8784 = vmatprep.subr.bf16.mxu1 %v11408_v26 }
  0xb5   :  { %8786 = vmatpush3.bf16.msra.mxu1 %v11429_v42 }
  0xb6   :  { %8787 = vmatprep.subr.bf16.mxu1 %v11408_v26 }
  0xb9   :  { %8789 = vmatpush3.bf16.msra.mxu1 %v11430_v44 }
  0xba   :  { %8790 = vmatprep.subr.bf16.mxu1 %v11408_v26 }
  0xbd   :  { %8792 = vmatpush3.bf16.msra.mxu1 %v11431_v45 }
  0xbe   :  { %8793 = vmatprep.subr.bf16.mxu1 %v11408_v26 }
  0xc1   :  { %8795 = vmatpush3.bf16.msra.mxu1 %v11432_v52 }
  0xc2   :  { %8796 = vmatprep.subr.bf16.mxu1 %v11408_v26 }
  0xc5   :  { %8798 = vmatpush3.bf16.msra.mxu1 %v11433_v53 }
  0xc6   :  { %8799 = vmatprep.subr.bf16.mxu1 %v11408_v26 }
  0xc9   :  { %8801 = vmatpush3.bf16.msra.mxu1 %v10239_v11 }
  0xca   :  { %8802 = vmatprep.subr.bf16.mxu1 %v11408_v26 }
  0xcd   :  { %8804 = vmatpush3.bf16.msra.mxu1 %v10241_v36 }
  0xce   :  { %8805 = vmatprep.subr.bf16.mxu1 %v11408_v26 }
  0xd0   :  { %7165 = vmatmul.mubr.f32.vlgmr.msra.gmra.mrb[8].mxu1 %v11417_v0 }
  0xd1   :  { %8807 = vmatpush3.bf16.msra.mxu1 %v10032_v22  ;;  %7199 = vmatprep.mubr.msk.f32.mxu1 %vm9960_vm2, %v11417_v0 }
  0xd2   :  { %8808 = vmatprep.subr.bf16.mxu1 %v11408_v26 }
  0xd5   :  { %8810 = vmatpush3.bf16.msra.mxu1 %v11429_v42 }
  0xd6   :  { %8811 = vmatprep.subr.bf16.mxu1 %v11408_v26 }
  0xd9   :  { %8813 = vmatpush3.bf16.msra.mxu1 %v11430_v44 }
  0xda   :  { %8814 = vmatprep.subr.bf16.mxu1 %v11408_v26 }
  0xdd   :  { %8816 = vmatpush3.bf16.msra.mxu1 %v11431_v45 }
  0xde   :  { %8817 = vmatprep.subr.bf16.mxu1 %v11408_v26 }
  0xe1   :  { %8819 = vmatpush3.bf16.msra.mxu1 %v11432_v52 }
  0xe2   :  { %8820 = vmatprep.subr.bf16.mxu1 %v11408_v26 }
  0xe3   :  { %v6867_v15 = vpop.f32.mrb[0].mxu1 }
  0xe4   :  { %v157_v17 = vadd.f32 %v6867_v15, %v5982_v14  ;;  %v146_v23 = vpop.f32.mrb[1].mxu1 }
  0xe5   :  { %8822 = vmatpush3.bf16.msra.mxu1 %v11433_v53  ;;  %v147_v18 = vadd.f32 %v5982_v14, %v146_v23 }
  0xe6   :  { %8823 = vmatprep.subr.bf16.mxu1 %v11408_v26 }
  0xe9   :  { %8825 = vmatpush3.bf16.msra.mxu1 %v10239_v11 }
  0xea   :  { %v6870_v43 = vpop.f32.mrb[2].mxu1  ;;  %8826 = vmatprep.subr.bf16.mxu1 %v11408_v26 }
  0xeb   :  { %v177_v62 = vadd.f32 %v6870_v43, %v5982_v14  ;;  %v166_v63 = vpop.f32.mrb[3].mxu1 }
  0xec   :  { %v167_v30 = vadd.f32 %v5982_v14, %v166_v63 }
  0xed   :  { %8828 = vmatpush3.bf16.msra.mxu1 %v10241_v36 }
  0xee   :  { %v6873_v38 = vpop.f32.mrb[4].mxu1  ;;  %8949 = vmatprep.subr.bf16.mxu1 %v11408_v26 }
  0xef   :  { %v197_v48 = vadd.f32 %v6873_v38, %v5982_v14  ;;  %v186_v55 = vpop.f32.mrb[5].mxu1 }
  0xf0   :  { %v187_v31 = vadd.f32 %v5982_v14, %v186_v55 }
  0xf2   :  { %v6876_v51 = vpop.f32.mrb[6].mxu1 }
  0xf3   :  { %v217_v21 = vadd.f32 %v6876_v51, %v5982_v14  ;;  %v206_v47 = vpop.f32.mrb[7].mxu1 }
  0xf4   :  { %v207_v56 = vadd.f32 %v5982_v14, %v206_v47 }
 0x127   :  { %v6947_v5 = vpop.f32.mrb[0].mxu0 }
 0x128   :  { %v10583_v8 = vadd.f32 %v6947_v5, %v157_v17  ;;  %v787_v54 = vpop.f32.mrb[1].mxu0 }
 0x129   :  { %v9816_v58 = vadd.f32 %v787_v54, %v147_v18 }
 0x12b   :  { %v6950_v60 = vpop.f32.mrb[2].mxu0 }
 0x12c   :  { %v10585_v59 = vadd.f32 %v6950_v60, %v177_v62  ;;  %v799_v3 = vpop.f32.mrb[3].mxu0 }
 0x12d   :  { %v10587_v50 = vadd.f32 %v799_v3, %v167_v30 }
 0x12f   :  { %v6953_v2 = vpop.f32.mrb[4].mxu0 }
 0x130   :  { %v10589_v32 = vadd.f32 %v6953_v2, %v197_v48  ;;  %v811_v1 = vpop.f32.mrb[5].mxu0 }
 0x131   :  { %v10591_v16 = vadd.f32 %v811_v1, %v187_v31 }
 0x133   :  { %v6956_v6 = vpop.f32.mrb[6].mxu0 }
 0x134   :  { %v10593_v15 = vadd.f32 %v6956_v6, %v217_v21  ;;  %v823_v14 = vpop.f32.mrb[7].mxu0 }
 0x135   :  { %v10595_v17 = vadd.f32 %v823_v14, %v207_v56 }
 0x1a3   :  { %v1457_v23 = vpop.f32.mrb[8].mxu1 }
 0x1a4   :  { %v1461_v43 = vadd.f32 %v9816_v58, %v1457_v23  ;;  %v7166_v63 = vpop.f32.mrb[9].mxu1 }
 0x1a6   :  { %9943 = vtanh.f32 %v1461_v43 }
 0x1b0   :  { %v9944_v62 = vpop.eup %9943 }
 0x1b1   :  { %v10597_v38 = vand.u32 4294901760, %v9944_v62 }
 0x1b3   :  { %v1545_v30 = vsub.f32 %v9944_v62, %v10597_v38  ;;  %7235 = vmatmul.mubr.f32.vlgmr.msra.gmra.mrb[8].mxu0 %v10597_v38 }
 0x1b4   :  { %8855 = vmatpush3.bf16.msra.mxu0 %v10427_v7  ;;  %7269 = vmatprep.mubr.msk.f32.mxu0 %vm9960_vm2, %v11417_v0 }
 0x1b5   :  { %8856 = vmatprep.subr.bf16.mxu0 %v11408_v26  ;;  %v1546_v48 = vand.u32 4294901760, %v1545_v30 }
 0x1b7   :  { %v1547_v55 = vsub.f32 %v1545_v30, %v1546_v48 }
 0x1b8   :  { %8858 = vmatpush3.bf16.msra.mxu0 %v10436_v39 }
 0x1b9   :  { %8859 = vmatprep.subr.bf16.mxu0 %v11408_v26  ;;  %v1548_v31 = vand.u32 4294901760, %v1547_v55 }
 0x1bb   :  { %7200 = vmatmul.mubr.f32.vlgmr.msra.gmra.mrb[10].mxu1 %v1548_v31 }
 0x1bc   :  { %8861 = vmatpush3.bf16.msra.mxu0 %v10446_v49  ;;  %8951 = vmatpush3.bf16.msra.mxu1 %v10032_v22 }
 0x1bd   :  { %8862 = vmatprep.subr.bf16.mxu0 %v11408_v26  ;;  %8952 = vmatprep.subr.bf16.mxu1 %v11408_v26 }
 0x1be   :  { %7409 = vmatprep.mubr.msk.f32.mxu1 %vm9960_vm2, %v11417_v0 }
 0x1c0   :  { %8864 = vmatpush3.bf16.msra.mxu0 %v10456_v24  ;;  %8954 = vmatpush3.bf16.msra.mxu1 %v11429_v42 }
 0x1c1   :  { %8865 = vmatprep.subr.bf16.mxu0 %v11408_v26  ;;  %8955 = vmatprep.subr.bf16.mxu1 %v11408_v26 }
 0x1c4   :  { %8867 = vmatpush3.bf16.msra.mxu0 %v10466_v25  ;;  %8957 = vmatpush3.bf16.msra.mxu1 %v11430_v44 }
 0x1c5   :  { %8868 = vmatprep.subr.bf16.mxu0 %v11408_v26  ;;  %8958 = vmatprep.subr.bf16.mxu1 %v11408_v26 }
 0x1c8   :  { %8870 = vmatpush3.bf16.msra.mxu0 %v10475_v19  ;;  %8960 = vmatpush3.bf16.msra.mxu1 %v11431_v45 }
 0x1c9   :  { %8871 = vmatprep.subr.bf16.mxu0 %v11408_v26  ;;  %8961 = vmatprep.subr.bf16.mxu1 %v11408_v26 }
 0x1cc   :  { %8873 = vmatpush3.bf16.msra.mxu0 %v10485_v34  ;;  %8963 = vmatpush3.bf16.msra.mxu1 %v11432_v52 }
 0x1cd   :  { %8874 = vmatprep.subr.bf16.mxu0 %v11408_v26  ;;  %8964 = vmatprep.subr.bf16.mxu1 %v11408_v26 }
 0x1d0   :  { %8876 = vmatpush3.bf16.msra.mxu0 %v10493_v35  ;;  %8966 = vmatpush3.bf16.msra.mxu1 %v11433_v53 }
 0x1d1   :  { %8877 = vmatprep.subr.bf16.mxu0 %v11408_v26  ;;  %8967 = vmatprep.subr.bf16.mxu1 %v11408_v26 }
 0x1d3   :  { %7270 = vmatmul.mubr.f32.vlgmr.msra.gmra.mrb[8].mxu0 %v1545_v30 }
 0x1d4   :  { %8879 = vmatpush3.bf16.msra.mxu0 %v10032_v22  ;;  %7304 = vmatprep.mubr.msk.f32.mxu0 %vm9960_vm2, %v11417_v0 }
 0x1d5   :  { %8880 = vmatprep.subr.bf16.mxu0 %v11408_v26  ;;  %8969 = vmatpush3.bf16.msra.mxu1 %v10239_v11 }
 0x1d6   :  { %8970 = vmatprep.subr.bf16.mxu1 %v11408_v26 }
 0x1d8   :  { %8882 = vmatpush3.bf16.msra.mxu0 %v11429_v42 }
 0x1d9   :  { %8883 = vmatprep.subr.bf16.mxu0 %v11408_v26  ;;  %8972 = vmatpush3.bf16.msra.mxu1 %v10241_v36 }
 0x1da   :  { %8973 = vmatprep.subr.bf16.mxu1 %v11408_v26 }
 0x1dc   :  { %8885 = vmatpush3.bf16.msra.mxu0 %v11430_v44 }
 0x1dd   :  { %8886 = vmatprep.subr.bf16.mxu0 %v11408_v26 }
 0x1e0   :  { %8888 = vmatpush3.bf16.msra.mxu0 %v11431_v45 }
 0x1e1   :  { %8889 = vmatprep.subr.bf16.mxu0 %v11408_v26 }
 0x1e4   :  { %8891 = vmatpush3.bf16.msra.mxu0 %v11432_v52 }
 0x1e5   :  { %8892 = vmatprep.subr.bf16.mxu0 %v11408_v26 }
 0x1e8   :  { %8894 = vmatpush3.bf16.msra.mxu0 %v11433_v53 }
 0x1e9   :  { %8895 = vmatprep.subr.bf16.mxu0 %v11408_v26 }
 0x1ec   :  { %8897 = vmatpush3.bf16.msra.mxu0 %v10239_v11 }
 0x1ed   :  { %8898 = vmatprep.subr.bf16.mxu0 %v11408_v26 }
 0x1f0   :  { %8900 = vmatpush3.bf16.msra.mxu0 %v10241_v36 }
 0x1f1   :  { %8901 = vmatprep.subr.bf16.mxu0 %v11408_v26 }
 0x1f3   :  { %7305 = vmatmul.mubr.f32.vlgmr.msra.gmra.mrb[8].mxu0 %v1546_v48 }
 0x1f4   :  { %8903 = vmatpush3.bf16.msra.mxu0 %v10316_v4  ;;  %7339 = vmatprep.mubr.msk.f32.mxu0 %vm9960_vm2, %v11417_v0 }
 0x1f5   :  { %8904 = vmatprep.subr.bf16.mxu0 %v11408_v26 }
 0x1f8   :  { %8906 = vmatpush3.bf16.msra.mxu0 %v10318_v10 }
 0x1f9   :  { %8907 = vmatprep.subr.bf16.mxu0 %v11408_v26 }
 0x1fc   :  { %8909 = vmatpush3.bf16.msra.mxu0 %v10320_v27 }
 0x1fd   :  { %8910 = vmatprep.subr.bf16.mxu0 %v11408_v26 }
 0x200   :  { %8912 = vmatpush3.bf16.msra.mxu0 %v10322_v28 }
 0x201   :  { %8913 = vmatprep.subr.bf16.mxu0 %v11408_v26 }
 0x204   :  { %8915 = vmatpush3.bf16.msra.mxu0 %v11434_v46 }
 0x205   :  { %8916 = vmatprep.subr.bf16.mxu0 %v11408_v26 }
 0x208   :  { %8918 = vmatpush3.bf16.msra.mxu0 %v11435_v37 }
 0x209   :  { %8919 = vmatprep.subr.bf16.mxu0 %v11408_v26 }
 0x20c   :  { %8921 = vmatpush3.bf16.msra.mxu0 %v11436_v41 }
 0x20d   :  { %8922 = vmatprep.subr.bf16.mxu0 %v11408_v26 }
 0x210   :  { %8924 = vmatpush3.bf16.msra.mxu0 %v10339_v9 }
 0x211   :  { %8925 = vmatprep.subr.bf16.mxu0 %v11408_v26 }
 0x213   :  { %7340 = vmatmul.mubr.f32.vlgmr.msra.gmra.mrb[8].mxu0 %v10597_v38 }
 0x214   :  { %8927 = vmatpush3.bf16.msra.mxu0 %v10032_v22  ;;  %7374 = vmatprep.mubr.msk.f32.mxu0 %vm9960_vm2, %v11417_v0 }
 0x215   :  { %8928 = vmatprep.subr.bf16.mxu0 %v11408_v26 }
 0x218   :  { %8930 = vmatpush3.bf16.msra.mxu0 %v11429_v42 }
 0x219   :  { %8931 = vmatprep.subr.bf16.mxu0 %v11408_v26 }
 0x21c   :  { %8933 = vmatpush3.bf16.msra.mxu0 %v11430_v44 }
 0x21d   :  { %8934 = vmatprep.subr.bf16.mxu0 %v11408_v26 }
 0x220   :  { %8936 = vmatpush3.bf16.msra.mxu0 %v11431_v45 }
 0x221   :  { %8937 = vmatprep.subr.bf16.mxu0 %v11408_v26 }
 0x224   :  { %8939 = vmatpush3.bf16.msra.mxu0 %v11432_v52 }
 0x225   :  { %8940 = vmatprep.subr.bf16.mxu0 %v11408_v26 }
 0x228   :  { %8942 = vmatpush3.bf16.msra.mxu0 %v11433_v53 }
 0x229   :  { %8943 = vmatprep.subr.bf16.mxu0 %v11408_v26 }
 0x22c   :  { %8945 = vmatpush3.bf16.msra.mxu0 %v10239_v11 }
 0x22d   :  { %8946 = vmatprep.subr.bf16.mxu0 %v11408_v26 }
 0x230   :  { %8948 = vmatpush3.bf16.msra.mxu0 %v10241_v36 }
 0x231   :  { %9093 = vmatprep.subr.bf16.mxu0 %v11408_v26 }
 0x233   :  { %7375 = vmatmul.mubr.f32.vlgmr.msra.gmra.mrb[8].mxu0 %v10597_v38 }
 0x234   :  { %9095 = vmatpush3.bf16.msra.mxu0 %v10032_v22  ;;  %7619 = vmatprep.mubr.msk.f32.mxu0 %vm9960_vm2, %v11417_v0 }
 0x235   :  { %9096 = vmatprep.subr.bf16.mxu0 %v11408_v26 }
 0x238   :  { %9098 = vmatpush3.bf16.msra.mxu0 %v11429_v42 }
 0x239   :  { %9099 = vmatprep.subr.bf16.mxu0 %v11408_v26 }
 0x23c   :  { %9101 = vmatpush3.bf16.msra.mxu0 %v11430_v44 }
 0x23d   :  { %9102 = vmatprep.subr.bf16.mxu0 %v11408_v26 }
 0x240   :  { %9104 = vmatpush3.bf16.msra.mxu0 %v11431_v45 }
 0x241   :  { %9105 = vmatprep.subr.bf16.mxu0 %v11408_v26 }
 0x244   :  { %9107 = vmatpush3.bf16.msra.mxu0 %v11432_v52 }
 0x245   :  { %9108 = vmatprep.subr.bf16.mxu0 %v11408_v26 }
 0x248   :  { %9110 = vmatpush3.bf16.msra.mxu0 %v11433_v53 }
 0x249   :  { %9111 = vmatprep.subr.bf16.mxu0 %v11408_v26 }
 0x24c   :  { %9113 = vmatpush3.bf16.msra.mxu0 %v10239_v11 }
 0x24d   :  { %9114 = vmatprep.subr.bf16.mxu0 %v11408_v26 }
 0x250   :  { %9116 = vmatpush3.bf16.msra.mxu0 %v10241_v36 }
 0x251   :  { %9117 = vmatprep.subr.bf16.mxu0 %v11408_v26 }
 0x28e   :  { %v1550_v51 = vpop.f32.mrb[10].mxu1 }
 0x28f   :  { %v7201_v21 = vpop.f32.mrb[11].mxu1 }
 0x306   :  { %v2100_v47 = vpop.f32.mrb[8].mxu0 }
 0x307   :  { %v9829_v56 = vadd.f32 %v2100_v47, %v1550_v51  ;;  %v7376_v18 = vpop.f32.mrb[9].mxu0 }
 0x309   :  { %v2104_v5 = vadd.f32 %v9829_v56, %v10583_v8 }
 0x30b   :  { %9945 = vtanh.f32 %v2104_v5 }
 0x315   :  { %v9946_v54 = vpop.eup %9945 }
 0x316   :  { %v10712_v58 = vand.u32 4294901760, %v9946_v54 }
 0x318   :  { %v2188_v60 = vsub.f32 %v9946_v54, %v10712_v58 }
 0x31a   :  { %v2189_v3 = vand.u32 4294901760, %v2188_v60 }
 0x31c   :  { %v2190_v2 = vsub.f32 %v2188_v60, %v2189_v3 }
 0x31e   :  { %v2191_v1 = vand.u32 4294901760, %v2190_v2 }
 0x320   :  { %7410 = vmatmul.mubr.f32.vlgmr.msra.gmra.mrb[12].mxu1 %v2191_v1 }
 0x321   :  { %8975 = vmatpush3.bf16.msra.mxu1 %v10345_v29  ;;  %7444 = vmatprep.mubr.msk.f32.mxu1 %vm9960_vm2, %v11417_v0 }
 0x322   :  { %8976 = vmatprep.subr.bf16.mxu1 %v11408_v26 }
 0x325   :  { %8978 = vmatpush3.bf16.msra.mxu1 %v10355_v40 }
 0x326   :  { %8979 = vmatprep.subr.bf16.mxu1 %v11408_v26 }
 0x329   :  { %8981 = vmatpush3.bf16.msra.mxu1 %v10367_v20 }
 0x32a   :  { %8982 = vmatprep.subr.bf16.mxu1 %v11408_v26 }
 0x32d   :  { %8984 = vmatpush3.bf16.msra.mxu1 %v10378_v12 }
 0x32e   :  { %8985 = vmatprep.subr.bf16.mxu1 %v11408_v26 }
 0x331   :  { %8987 = vmatpush3.bf16.msra.mxu1 %v10389_v57 }
 0x332   :  { %8988 = vmatprep.subr.bf16.mxu1 %v11408_v26 }
 0x335   :  { %8990 = vmatpush3.bf16.msra.mxu1 %v10402_v61 }
 0x336   :  { %8991 = vmatprep.subr.bf16.mxu1 %v11408_v26 }
 0x339   :  { %8993 = vmatpush3.bf16.msra.mxu1 %v10411_v13 }
 0x33a   :  { %8994 = vmatprep.subr.bf16.mxu1 %v11408_v26 }
 0x33d   :  { %8996 = vmatpush3.bf16.msra.mxu1 %v10419_v33 }
 0x33e   :  { %8997 = vmatprep.subr.bf16.mxu1 %v11408_v26 }
 0x340   :  { %7445 = vmatmul.mubr.f32.vlgmr.msra.gmra.mrb[12].mxu1 %v10712_v58 }
 0x341   :  { %8999 = vmatpush3.bf16.msra.mxu1 %v10427_v7  ;;  %7479 = vmatprep.mubr.msk.f32.mxu1 %vm9960_vm2, %v11417_v0 }
 0x342   :  { %9000 = vmatprep.subr.bf16.mxu1 %v11408_v26 }
 0x345   :  { %9002 = vmatpush3.bf16.msra.mxu1 %v10436_v39 }
 0x346   :  { %9003 = vmatprep.subr.bf16.mxu1 %v11408_v26 }
 0x349   :  { %9005 = vmatpush3.bf16.msra.mxu1 %v10446_v49 }
 0x34a   :  { %9006 = vmatprep.subr.bf16.mxu1 %v11408_v26 }
 0x34d   :  { %9008 = vmatpush3.bf16.msra.mxu1 %v10456_v24 }
 0x34e   :  { %9009 = vmatprep.subr.bf16.mxu1 %v11408_v26 }
 0x351   :  { %9011 = vmatpush3.bf16.msra.mxu1 %v10466_v25 }
 0x352   :  { %9012 = vmatprep.subr.bf16.mxu1 %v11408_v26 }
 0x355   :  { %9014 = vmatpush3.bf16.msra.mxu1 %v10475_v19 }
 0x356   :  { %9015 = vmatprep.subr.bf16.mxu1 %v11408_v26 }
 0x359   :  { %9017 = vmatpush3.bf16.msra.mxu1 %v10485_v34 }
 0x35a   :  { %9018 = vmatprep.subr.bf16.mxu1 %v11408_v26 }
 0x35d   :  { %9020 = vmatpush3.bf16.msra.mxu1 %v10493_v35 }
 0x35e   :  { %9021 = vmatprep.subr.bf16.mxu1 %v11408_v26 }
 0x360   :  { %7480 = vmatmul.mubr.f32.vlgmr.msra.gmra.mrb[12].mxu1 %v2188_v60 }
 0x361   :  { %9023 = vmatpush3.bf16.msra.mxu1 %v10032_v22  ;;  %7514 = vmatprep.mubr.msk.f32.mxu1 %vm9960_vm2, %v11417_v0 }
 0x362   :  { %9024 = vmatprep.subr.bf16.mxu1 %v11408_v26 }
 0x365   :  { %9026 = vmatpush3.bf16.msra.mxu1 %v11429_v42 }
 0x366   :  { %9027 = vmatprep.subr.bf16.mxu1 %v11408_v26 }
 0x369   :  { %9029 = vmatpush3.bf16.msra.mxu1 %v11430_v44 }
 0x36a   :  { %9030 = vmatprep.subr.bf16.mxu1 %v11408_v26 }
 0x36d   :  { %9032 = vmatpush3.bf16.msra.mxu1 %v11431_v45 }
 0x36e   :  { %9033 = vmatprep.subr.bf16.mxu1 %v11408_v26 }
 0x371   :  { %9035 = vmatpush3.bf16.msra.mxu1 %v11432_v52 }
 0x372   :  { %9036 = vmatprep.subr.bf16.mxu1 %v11408_v26 }
 0x375   :  { %9038 = vmatpush3.bf16.msra.mxu1 %v11433_v53 }
 0x376   :  { %9039 = vmatprep.subr.bf16.mxu1 %v11408_v26 }
 0x379   :  { %9041 = vmatpush3.bf16.msra.mxu1 %v10239_v11 }
 0x37a   :  { %9042 = vmatprep.subr.bf16.mxu1 %v11408_v26 }
 0x37d   :  { %9044 = vmatpush3.bf16.msra.mxu1 %v10241_v36 }
 0x37e   :  { %9045 = vmatprep.subr.bf16.mxu1 %v11408_v26 }
 0x380   :  { %7515 = vmatmul.mubr.f32.vlgmr.msra.gmra.mrb[12].mxu1 %v2189_v3 }
 0x381   :  { %9047 = vmatpush3.bf16.msra.mxu1 %v10316_v4  ;;  %7549 = vmatprep.mubr.msk.f32.mxu1 %vm9960_vm2, %v11417_v0 }
 0x382   :  { %9048 = vmatprep.subr.bf16.mxu1 %v11408_v26 }
 0x385   :  { %9050 = vmatpush3.bf16.msra.mxu1 %v10318_v10 }
 0x386   :  { %9051 = vmatprep.subr.bf16.mxu1 %v11408_v26 }
 0x389   :  { %9053 = vmatpush3.bf16.msra.mxu1 %v10320_v27 }
 0x38a   :  { %9054 = vmatprep.subr.bf16.mxu1 %v11408_v26 }
 0x38d   :  { %9056 = vmatpush3.bf16.msra.mxu1 %v10322_v28 }
 0x38e   :  { %9057 = vmatprep.subr.bf16.mxu1 %v11408_v26 }
 0x391   :  { %9059 = vmatpush3.bf16.msra.mxu1 %v11434_v46 }
 0x392   :  { %9060 = vmatprep.subr.bf16.mxu1 %v11408_v26 }
 0x395   :  { %9062 = vmatpush3.bf16.msra.mxu1 %v11435_v37 }
 0x396   :  { %9063 = vmatprep.subr.bf16.mxu1 %v11408_v26 }
 0x399   :  { %9065 = vmatpush3.bf16.msra.mxu1 %v11436_v41 }
 0x39a   :  { %9066 = vmatprep.subr.bf16.mxu1 %v11408_v26 }
 0x39d   :  { %9068 = vmatpush3.bf16.msra.mxu1 %v10339_v9 }
 0x39e   :  { %9069 = vmatprep.subr.bf16.mxu1 %v11408_v26 }
 0x3a0   :  { %7550 = vmatmul.mubr.f32.vlgmr.msra.gmra.mrb[12].mxu1 %v10712_v58 }
 0x3a1   :  { %9071 = vmatpush3.bf16.msra.mxu1 %v10032_v22  ;;  %7584 = vmatprep.mubr.msk.f32.mxu1 %vm9960_vm2, %v11417_v0 }
 0x3a2   :  { %9072 = vmatprep.subr.bf16.mxu1 %v11408_v26 }
 0x3a5   :  { %9074 = vmatpush3.bf16.msra.mxu1 %v11429_v42 }
 0x3a6   :  { %9075 = vmatprep.subr.bf16.mxu1 %v11408_v26 }
 0x3a9   :  { %9077 = vmatpush3.bf16.msra.mxu1 %v11430_v44 }
 0x3aa   :  { %9078 = vmatprep.subr.bf16.mxu1 %v11408_v26 }
 0x3ad   :  { %9080 = vmatpush3.bf16.msra.mxu1 %v11431_v45 }
 0x3ae   :  { %9081 = vmatprep.subr.bf16.mxu1 %v11408_v26 }
 0x3b1   :  { %9083 = vmatpush3.bf16.msra.mxu1 %v11432_v52 }
 0x3b2   :  { %9084 = vmatprep.subr.bf16.mxu1 %v11408_v26 }
 0x3b5   :  { %9086 = vmatpush3.bf16.msra.mxu1 %v11433_v53 }
 0x3b6   :  { %9087 = vmatprep.subr.bf16.mxu1 %v11408_v26 }
 0x3b9   :  { %9089 = vmatpush3.bf16.msra.mxu1 %v10239_v11 }
 0x3ba   :  { %9090 = vmatprep.subr.bf16.mxu1 %v11408_v26 }
 0x3bd   :  { %9092 = vmatpush3.bf16.msra.mxu1 %v10241_v36 }
 0x3be   :  { %9237 = vmatprep.subr.bf16.mxu1 %v11408_v26 }
 0x3c0   :  { %7585 = vmatmul.mubr.f32.vlgmr.msra.gmra.mrb[12].mxu1 %v10712_v58 }
 0x3c1   :  { %9239 = vmatpush3.bf16.msra.mxu1 %v10032_v22  ;;  %7829 = vmatprep.mubr.msk.f32.mxu1 %vm9960_vm2, %v11417_v0 }
 0x3c2   :  { %9240 = vmatprep.subr.bf16.mxu1 %v11408_v26 }
 0x3c5   :  { %9242 = vmatpush3.bf16.msra.mxu1 %v11429_v42 }
 0x3c6   :  { %9243 = vmatprep.subr.bf16.mxu1 %v11408_v26 }
 0x3c9   :  { %9245 = vmatpush3.bf16.msra.mxu1 %v11430_v44 }
 0x3ca   :  { %9246 = vmatprep.subr.bf16.mxu1 %v11408_v26 }
 0x3cd   :  { %9248 = vmatpush3.bf16.msra.mxu1 %v11431_v45 }
 0x3ce   :  { %9249 = vmatprep.subr.bf16.mxu1 %v11408_v26 }
 0x3d1   :  { %9251 = vmatpush3.bf16.msra.mxu1 %v11432_v52 }
 0x3d2   :  { %9252 = vmatprep.subr.bf16.mxu1 %v11408_v26 }
 0x3d5   :  { %9254 = vmatpush3.bf16.msra.mxu1 %v11433_v53 }
 0x3d6   :  { %9255 = vmatprep.subr.bf16.mxu1 %v11408_v26 }
 0x3d9   :  { %9257 = vmatpush3.bf16.msra.mxu1 %v10239_v11 }
 0x3da   :  { %9258 = vmatprep.subr.bf16.mxu1 %v11408_v26 }
 0x3dd   :  { %9260 = vmatpush3.bf16.msra.mxu1 %v10241_v36 }
 0x3de   :  { %9261 = vmatprep.subr.bf16.mxu1 %v11408_v26 }
 0x493   :  { %v2743_v8 = vpop.f32.mrb[12].mxu1 }
 0x494   :  { %v2747_v6 = vadd.f32 %v10587_v50, %v2743_v8  ;;  %v7586_v14 = vpop.f32.mrb[13].mxu1 }
 0x496   :  { %9947 = vtanh.f32 %v2747_v6 }
 0x4a0   :  { %v9948_v23 = vpop.eup %9947 }
 0x4a1   :  { %v10827_v43 = vand.u32 4294901760, %v9948_v23 }
 0x4a3   :  { %v2831_v63 = vsub.f32 %v9948_v23, %v10827_v43 }
 0x4a5   :  { %v2832_v62 = vand.u32 4294901760, %v2831_v63 }
 0x4a7   :  { %v2833_v38 = vsub.f32 %v2831_v63, %v2832_v62 }
 0x4a9   :  { %v2834_v30 = vand.u32 4294901760, %v2833_v38 }
 0x4ab   :  { %7620 = vmatmul.mubr.f32.vlgmr.msra.gmra.mrb[10].mxu0 %v2834_v30 }
 0x4ac   :  { %9119 = vmatpush3.bf16.msra.mxu0 %v10345_v29  ;;  %7654 = vmatprep.mubr.msk.f32.mxu0 %vm9960_vm2, %v11417_v0 }
 0x4ad   :  { %9120 = vmatprep.subr.bf16.mxu0 %v11408_v26 }
 0x4b0   :  { %9122 = vmatpush3.bf16.msra.mxu0 %v10355_v40 }
 0x4b1   :  { %9123 = vmatprep.subr.bf16.mxu0 %v11408_v26 }
 0x4b4   :  { %9125 = vmatpush3.bf16.msra.mxu0 %v10367_v20 }
 0x4b5   :  { %9126 = vmatprep.subr.bf16.mxu0 %v11408_v26 }
 0x4b8   :  { %9128 = vmatpush3.bf16.msra.mxu0 %v10378_v12 }
 0x4b9   :  { %9129 = vmatprep.subr.bf16.mxu0 %v11408_v26 }
 0x4bc   :  { %9131 = vmatpush3.bf16.msra.mxu0 %v10389_v57 }
 0x4bd   :  { %9132 = vmatprep.subr.bf16.mxu0 %v11408_v26 }
 0x4c0   :  { %9134 = vmatpush3.bf16.msra.mxu0 %v10402_v61 }
 0x4c1   :  { %9135 = vmatprep.subr.bf16.mxu0 %v11408_v26 }
 0x4c4   :  { %9137 = vmatpush3.bf16.msra.mxu0 %v10411_v13 }
 0x4c5   :  { %9138 = vmatprep.subr.bf16.mxu0 %v11408_v26 }
 0x4c8   :  { %9140 = vmatpush3.bf16.msra.mxu0 %v10419_v33 }
 0x4c9   :  { %9141 = vmatprep.subr.bf16.mxu0 %v11408_v26 }
 0x4cb   :  { %7655 = vmatmul.mubr.f32.vlgmr.msra.gmra.mrb[10].mxu0 %v10827_v43 }
 0x4cc   :  { %9143 = vmatpush3.bf16.msra.mxu0 %v10427_v7  ;;  %7689 = vmatprep.mubr.msk.f32.mxu0 %vm9960_vm2, %v11417_v0 }
 0x4cd   :  { %9144 = vmatprep.subr.bf16.mxu0 %v11408_v26 }
 0x4d0   :  { %9146 = vmatpush3.bf16.msra.mxu0 %v10436_v39 }
 0x4d1   :  { %9147 = vmatprep.subr.bf16.mxu0 %v11408_v26 }
 0x4d4   :  { %9149 = vmatpush3.bf16.msra.mxu0 %v10446_v49 }
 0x4d5   :  { %9150 = vmatprep.subr.bf16.mxu0 %v11408_v26 }
 0x4d8   :  { %9152 = vmatpush3.bf16.msra.mxu0 %v10456_v24 }
 0x4d9   :  { %9153 = vmatprep.subr.bf16.mxu0 %v11408_v26 }
 0x4dc   :  { %9155 = vmatpush3.bf16.msra.mxu0 %v10466_v25 }
 0x4dd   :  { %9156 = vmatprep.subr.bf16.mxu0 %v11408_v26 }
 0x4e0   :  { %9158 = vmatpush3.bf16.msra.mxu0 %v10475_v19 }
 0x4e1   :  { %9159 = vmatprep.subr.bf16.mxu0 %v11408_v26 }
 0x4e4   :  { %9161 = vmatpush3.bf16.msra.mxu0 %v10485_v34 }
 0x4e5   :  { %9162 = vmatprep.subr.bf16.mxu0 %v11408_v26 }
 0x4e8   :  { %9164 = vmatpush3.bf16.msra.mxu0 %v10493_v35 }
 0x4e9   :  { %9165 = vmatprep.subr.bf16.mxu0 %v11408_v26 }
 0x4eb   :  { %7690 = vmatmul.mubr.f32.vlgmr.msra.gmra.mrb[10].mxu0 %v2831_v63 }
 0x4ec   :  { %9167 = vmatpush3.bf16.msra.mxu0 %v10032_v22  ;;  %7724 = vmatprep.mubr.msk.f32.mxu0 %vm9960_vm2, %v11417_v0 }
 0x4ed   :  { %9168 = vmatprep.subr.bf16.mxu0 %v11408_v26 }
 0x4f0   :  { %9170 = vmatpush3.bf16.msra.mxu0 %v11429_v42 }
 0x4f1   :  { %9171 = vmatprep.subr.bf16.mxu0 %v11408_v26 }
 0x4f4   :  { %9173 = vmatpush3.bf16.msra.mxu0 %v11430_v44 }
 0x4f5   :  { %9174 = vmatprep.subr.bf16.mxu0 %v11408_v26 }
 0x4f8   :  { %9176 = vmatpush3.bf16.msra.mxu0 %v11431_v45 }
 0x4f9   :  { %9177 = vmatprep.subr.bf16.mxu0 %v11408_v26 }
 0x4fc   :  { %9179 = vmatpush3.bf16.msra.mxu0 %v11432_v52 }
 0x4fd   :  { %9180 = vmatprep.subr.bf16.mxu0 %v11408_v26 }
 0x500   :  { %9182 = vmatpush3.bf16.msra.mxu0 %v11433_v53 }
 0x501   :  { %9183 = vmatprep.subr.bf16.mxu0 %v11408_v26 }
 0x504   :  { %9185 = vmatpush3.bf16.msra.mxu0 %v10239_v11 }
 0x505   :  { %9186 = vmatprep.subr.bf16.mxu0 %v11408_v26 }
 0x508   :  { %9188 = vmatpush3.bf16.msra.mxu0 %v10241_v36 }
 0x509   :  { %9189 = vmatprep.subr.bf16.mxu0 %v11408_v26 }
 0x50b   :  { %7725 = vmatmul.mubr.f32.vlgmr.msra.gmra.mrb[10].mxu0 %v2832_v62 }
 0x50c   :  { %9191 = vmatpush3.bf16.msra.mxu0 %v10316_v4  ;;  %7759 = vmatprep.mubr.msk.f32.mxu0 %vm9960_vm2, %v11417_v0 }
 0x50d   :  { %9192 = vmatprep.subr.bf16.mxu0 %v11408_v26 }
 0x510   :  { %9194 = vmatpush3.bf16.msra.mxu0 %v10318_v10 }
 0x511   :  { %9195 = vmatprep.subr.bf16.mxu0 %v11408_v26 }
 0x514   :  { %9197 = vmatpush3.bf16.msra.mxu0 %v10320_v27 }
 0x515   :  { %9198 = vmatprep.subr.bf16.mxu0 %v11408_v26 }
 0x518   :  { %9200 = vmatpush3.bf16.msra.mxu0 %v10322_v28 }
 0x519   :  { %9201 = vmatprep.subr.bf16.mxu0 %v11408_v26 }
 0x51c   :  { %9203 = vmatpush3.bf16.msra.mxu0 %v11434_v46 }
 0x51d   :  { %9204 = vmatprep.subr.bf16.mxu0 %v11408_v26 }
 0x520   :  { %9206 = vmatpush3.bf16.msra.mxu0 %v11435_v37 }
 0x521   :  { %9207 = vmatprep.subr.bf16.mxu0 %v11408_v26 }
 0x524   :  { %9209 = vmatpush3.bf16.msra.mxu0 %v11436_v41 }
 0x525   :  { %9210 = vmatprep.subr.bf16.mxu0 %v11408_v26 }
 0x528   :  { %9212 = vmatpush3.bf16.msra.mxu0 %v10339_v9 }
 0x529   :  { %9213 = vmatprep.subr.bf16.mxu0 %v11408_v26 }
 0x52b   :  { %7760 = vmatmul.mubr.f32.vlgmr.msra.gmra.mrb[10].mxu0 %v10827_v43 }
 0x52c   :  { %9215 = vmatpush3.bf16.msra.mxu0 %v10032_v22  ;;  %7794 = vmatprep.mubr.msk.f32.mxu0 %vm9960_vm2, %v11417_v0 }
 0x52d   :  { %9216 = vmatprep.subr.bf16.mxu0 %v11408_v26 }
 0x530   :  { %9218 = vmatpush3.bf16.msra.mxu0 %v11429_v42 }
 0x531   :  { %9219 = vmatprep.subr.bf16.mxu0 %v11408_v26 }
 0x534   :  { %9221 = vmatpush3.bf16.msra.mxu0 %v11430_v44 }
 0x535   :  { %9222 = vmatprep.subr.bf16.mxu0 %v11408_v26 }
 0x538   :  { %9224 = vmatpush3.bf16.msra.mxu0 %v11431_v45 }
 0x539   :  { %9225 = vmatprep.subr.bf16.mxu0 %v11408_v26 }
 0x53c   :  { %9227 = vmatpush3.bf16.msra.mxu0 %v11432_v52 }
 0x53d   :  { %9228 = vmatprep.subr.bf16.mxu0 %v11408_v26 }
 0x540   :  { %9230 = vmatpush3.bf16.msra.mxu0 %v11433_v53 }
 0x541   :  { %9231 = vmatprep.subr.bf16.mxu0 %v11408_v26 }
 0x544   :  { %9233 = vmatpush3.bf16.msra.mxu0 %v10239_v11 }
 0x545   :  { %9234 = vmatprep.subr.bf16.mxu0 %v11408_v26 }
 0x548   :  { %9236 = vmatpush3.bf16.msra.mxu0 %v10241_v36 }
 0x549   :  { %9381 = vmatprep.subr.bf16.mxu0 %v11408_v26 }
 0x54b   :  { %7795 = vmatmul.mubr.f32.vlgmr.msra.gmra.mrb[10].mxu0 %v10827_v43 }
 0x54c   :  { %9383 = vmatpush3.bf16.msra.mxu0 %v10032_v22  ;;  %8039 = vmatprep.mubr.msk.f32.mxu0 %vm9960_vm2, %v11417_v0 }
 0x54d   :  { %9384 = vmatprep.subr.bf16.mxu0 %v11408_v26 }
 0x550   :  { %9386 = vmatpush3.bf16.msra.mxu0 %v11429_v42 }
 0x551   :  { %9387 = vmatprep.subr.bf16.mxu0 %v11408_v26 }
 0x554   :  { %9389 = vmatpush3.bf16.msra.mxu0 %v11430_v44 }
 0x555   :  { %9390 = vmatprep.subr.bf16.mxu0 %v11408_v26 }
 0x558   :  { %9392 = vmatpush3.bf16.msra.mxu0 %v11431_v45 }
 0x559   :  { %9393 = vmatprep.subr.bf16.mxu0 %v11408_v26 }
 0x55c   :  { %9395 = vmatpush3.bf16.msra.mxu0 %v11432_v52 }
 0x55d   :  { %9396 = vmatprep.subr.bf16.mxu0 %v11408_v26 }
 0x560   :  { %9398 = vmatpush3.bf16.msra.mxu0 %v11433_v53 }
 0x561   :  { %9399 = vmatprep.subr.bf16.mxu0 %v11408_v26 }
 0x564   :  { %9401 = vmatpush3.bf16.msra.mxu0 %v10239_v11 }
 0x565   :  { %9402 = vmatprep.subr.bf16.mxu0 %v11408_v26 }
 0x568   :  { %9404 = vmatpush3.bf16.msra.mxu0 %v10241_v36 }
 0x569   :  { %9405 = vmatprep.subr.bf16.mxu0 %v11408_v26 }
 0x61e   :  { %v3386_v50 = vpop.f32.mrb[10].mxu0 }
 0x61f   :  { %v3390_v48 = vadd.f32 %v10585_v59, %v3386_v50  ;;  %v7796_v55 = vpop.f32.mrb[11].mxu0 }
 0x621   :  { %9949 = vtanh.f32 %v3390_v48 }
 0x62b   :  { %v9950_v31 = vpop.eup %9949 }
 0x62c   :  { %v10942_v51 = vand.u32 4294901760, %v9950_v31 }
 0x62e   :  { %v3474_v21 = vsub.f32 %v9950_v31, %v10942_v51 }
 0x630   :  { %v3475_v47 = vand.u32 4294901760, %v3474_v21 }
 0x632   :  { %v3476_v56 = vsub.f32 %v3474_v21, %v3475_v47 }
 0x634   :  { %v3477_v18 = vand.u32 4294901760, %v3476_v56 }
 0x636   :  { %7830 = vmatmul.mubr.f32.vlgmr.msra.gmra.mrb[14].mxu1 %v3477_v18 }
 0x637   :  { %9263 = vmatpush3.bf16.msra.mxu1 %v10345_v29  ;;  %7864 = vmatprep.mubr.msk.f32.mxu1 %vm9960_vm2, %v11417_v0 }
 0x638   :  { %9264 = vmatprep.subr.bf16.mxu1 %v11408_v26 }
 0x63b   :  { %9266 = vmatpush3.bf16.msra.mxu1 %v10355_v40 }
 0x63c   :  { %9267 = vmatprep.subr.bf16.mxu1 %v11408_v26 }
 0x63f   :  { %9269 = vmatpush3.bf16.msra.mxu1 %v10367_v20 }
 0x640   :  { %9270 = vmatprep.subr.bf16.mxu1 %v11408_v26 }
 0x643   :  { %9272 = vmatpush3.bf16.msra.mxu1 %v10378_v12 }
 0x644   :  { %9273 = vmatprep.subr.bf16.mxu1 %v11408_v26 }
 0x647   :  { %9275 = vmatpush3.bf16.msra.mxu1 %v10389_v57 }
 0x648   :  { %9276 = vmatprep.subr.bf16.mxu1 %v11408_v26 }
 0x64b   :  { %9278 = vmatpush3.bf16.msra.mxu1 %v10402_v61 }
 0x64c   :  { %9279 = vmatprep.subr.bf16.mxu1 %v11408_v26 }
 0x64f   :  { %9281 = vmatpush3.bf16.msra.mxu1 %v10411_v13 }
 0x650   :  { %9282 = vmatprep.subr.bf16.mxu1 %v11408_v26 }
 0x653   :  { %9284 = vmatpush3.bf16.msra.mxu1 %v10419_v33 }
 0x654   :  { %9285 = vmatprep.subr.bf16.mxu1 %v11408_v26 }
 0x656   :  { %7865 = vmatmul.mubr.f32.vlgmr.msra.gmra.mrb[14].mxu1 %v10942_v51 }
 0x657   :  { %9287 = vmatpush3.bf16.msra.mxu1 %v10427_v7  ;;  %7899 = vmatprep.mubr.msk.f32.mxu1 %vm9960_vm2, %v11417_v0 }
 0x658   :  { %9288 = vmatprep.subr.bf16.mxu1 %v11408_v26 }
 0x65b   :  { %9290 = vmatpush3.bf16.msra.mxu1 %v10436_v39 }
 0x65c   :  { %9291 = vmatprep.subr.bf16.mxu1 %v11408_v26 }
 0x65f   :  { %9293 = vmatpush3.bf16.msra.mxu1 %v10446_v49 }
 0x660   :  { %9294 = vmatprep.subr.bf16.mxu1 %v11408_v26 }
 0x663   :  { %9296 = vmatpush3.bf16.msra.mxu1 %v10456_v24 }
 0x664   :  { %9297 = vmatprep.subr.bf16.mxu1 %v11408_v26 }
 0x667   :  { %9299 = vmatpush3.bf16.msra.mxu1 %v10466_v25 }
 0x668   :  { %9300 = vmatprep.subr.bf16.mxu1 %v11408_v26 }
 0x66b   :  { %9302 = vmatpush3.bf16.msra.mxu1 %v10475_v19 }
 0x66c   :  { %9303 = vmatprep.subr.bf16.mxu1 %v11408_v26 }
 0x66f   :  { %9305 = vmatpush3.bf16.msra.mxu1 %v10485_v34 }
 0x670   :  { %9306 = vmatprep.subr.bf16.mxu1 %v11408_v26 }
 0x673   :  { %9308 = vmatpush3.bf16.msra.mxu1 %v10493_v35 }
 0x674   :  { %9309 = vmatprep.subr.bf16.mxu1 %v11408_v26 }
 0x676   :  { %7900 = vmatmul.mubr.f32.vlgmr.msra.gmra.mrb[14].mxu1 %v3474_v21 }
 0x677   :  { %9311 = vmatpush3.bf16.msra.mxu1 %v10032_v22  ;;  %7934 = vmatprep.mubr.msk.f32.mxu1 %vm9960_vm2, %v11417_v0 }
 0x678   :  { %9312 = vmatprep.subr.bf16.mxu1 %v11408_v26 }
 0x67b   :  { %9314 = vmatpush3.bf16.msra.mxu1 %v11429_v42 }
 0x67c   :  { %9315 = vmatprep.subr.bf16.mxu1 %v11408_v26 }
 0x67f   :  { %9317 = vmatpush3.bf16.msra.mxu1 %v11430_v44 }
 0x680   :  { %9318 = vmatprep.subr.bf16.mxu1 %v11408_v26 }
 0x683   :  { %9320 = vmatpush3.bf16.msra.mxu1 %v11431_v45 }
 0x684   :  { %9321 = vmatprep.subr.bf16.mxu1 %v11408_v26 }
 0x687   :  { %9323 = vmatpush3.bf16.msra.mxu1 %v11432_v52 }
 0x688   :  { %9324 = vmatprep.subr.bf16.mxu1 %v11408_v26 }
 0x68b   :  { %9326 = vmatpush3.bf16.msra.mxu1 %v11433_v53 }
 0x68c   :  { %9327 = vmatprep.subr.bf16.mxu1 %v11408_v26 }
 0x68f   :  { %9329 = vmatpush3.bf16.msra.mxu1 %v10239_v11 }
 0x690   :  { %9330 = vmatprep.subr.bf16.mxu1 %v11408_v26 }
 0x693   :  { %9332 = vmatpush3.bf16.msra.mxu1 %v10241_v36 }
 0x694   :  { %9333 = vmatprep.subr.bf16.mxu1 %v11408_v26 }
 0x696   :  { %7935 = vmatmul.mubr.f32.vlgmr.msra.gmra.mrb[14].mxu1 %v3475_v47 }
 0x697   :  { %9335 = vmatpush3.bf16.msra.mxu1 %v10316_v4  ;;  %7969 = vmatprep.mubr.msk.f32.mxu1 %vm9960_vm2, %v11417_v0 }
 0x698   :  { %9336 = vmatprep.subr.bf16.mxu1 %v11408_v26 }
 0x69b   :  { %9338 = vmatpush3.bf16.msra.mxu1 %v10318_v10 }
 0x69c   :  { %9339 = vmatprep.subr.bf16.mxu1 %v11408_v26 }
 0x69f   :  { %9341 = vmatpush3.bf16.msra.mxu1 %v10320_v27 }
 0x6a0   :  { %9342 = vmatprep.subr.bf16.mxu1 %v11408_v26 }
 0x6a3   :  { %9344 = vmatpush3.bf16.msra.mxu1 %v10322_v28 }
 0x6a4   :  { %9345 = vmatprep.subr.bf16.mxu1 %v11408_v26 }
 0x6a7   :  { %9347 = vmatpush3.bf16.msra.mxu1 %v11434_v46 }
 0x6a8   :  { %9348 = vmatprep.subr.bf16.mxu1 %v11408_v26 }
 0x6ab   :  { %9350 = vmatpush3.bf16.msra.mxu1 %v11435_v37 }
 0x6ac   :  { %9351 = vmatprep.subr.bf16.mxu1 %v11408_v26 }
 0x6af   :  { %9353 = vmatpush3.bf16.msra.mxu1 %v11436_v41 }
 0x6b0   :  { %9354 = vmatprep.subr.bf16.mxu1 %v11408_v26 }
 0x6b3   :  { %9356 = vmatpush3.bf16.msra.mxu1 %v10339_v9 }
 0x6b4   :  { %9357 = vmatprep.subr.bf16.mxu1 %v11408_v26 }
 0x6b6   :  { %7970 = vmatmul.mubr.f32.vlgmr.msra.gmra.mrb[14].mxu1 %v10942_v51 }
 0x6b7   :  { %9359 = vmatpush3.bf16.msra.mxu1 %v10032_v22  ;;  %8004 = vmatprep.mubr.msk.f32.mxu1 %vm9960_vm2, %v11417_v0 }
 0x6b8   :  { %9360 = vmatprep.subr.bf16.mxu1 %v11408_v26 }
 0x6bb   :  { %9362 = vmatpush3.bf16.msra.mxu1 %v11429_v42 }
 0x6bc   :  { %9363 = vmatprep.subr.bf16.mxu1 %v11408_v26 }
 0x6bf   :  { %9365 = vmatpush3.bf16.msra.mxu1 %v11430_v44 }
 0x6c0   :  { %9366 = vmatprep.subr.bf16.mxu1 %v11408_v26 }
 0x6c3   :  { %9368 = vmatpush3.bf16.msra.mxu1 %v11431_v45 }
 0x6c4   :  { %9369 = vmatprep.subr.bf16.mxu1 %v11408_v26 }
 0x6c7   :  { %9371 = vmatpush3.bf16.msra.mxu1 %v11432_v52 }
 0x6c8   :  { %9372 = vmatprep.subr.bf16.mxu1 %v11408_v26 }
 0x6cb   :  { %9374 = vmatpush3.bf16.msra.mxu1 %v11433_v53 }
 0x6cc   :  { %9375 = vmatprep.subr.bf16.mxu1 %v11408_v26 }
 0x6cf   :  { %9377 = vmatpush3.bf16.msra.mxu1 %v10239_v11 }
 0x6d0   :  { %9378 = vmatprep.subr.bf16.mxu1 %v11408_v26 }
 0x6d3   :  { %9380 = vmatpush3.bf16.msra.mxu1 %v10241_v36 }
 0x6d4   :  { %9525 = vmatprep.subr.bf16.mxu1 %v11408_v26 }
 0x6d6   :  { %8005 = vmatmul.mubr.f32.vlgmr.msra.gmra.mrb[14].mxu1 %v10942_v51 }
 0x6d7   :  { %9527 = vmatpush3.bf16.msra.mxu1 %v10032_v22  ;;  %8249 = vmatprep.mubr.msk.f32.mxu1 %vm9960_vm2, %v11417_v0 }
 0x6d8   :  { %9528 = vmatprep.subr.bf16.mxu1 %v11408_v26 }
 0x6db   :  { %9530 = vmatpush3.bf16.msra.mxu1 %v11429_v42 }
 0x6dc   :  { %9531 = vmatprep.subr.bf16.mxu1 %v11408_v26 }
 0x6df   :  { %9533 = vmatpush3.bf16.msra.mxu1 %v11430_v44 }
 0x6e0   :  { %9534 = vmatprep.subr.bf16.mxu1 %v11408_v26 }
 0x6e3   :  { %9536 = vmatpush3.bf16.msra.mxu1 %v11431_v45 }
 0x6e4   :  { %9537 = vmatprep.subr.bf16.mxu1 %v11408_v26 }
 0x6e7   :  { %9539 = vmatpush3.bf16.msra.mxu1 %v11432_v52 }
 0x6e8   :  { %9540 = vmatprep.subr.bf16.mxu1 %v11408_v26 }
 0x6eb   :  { %9542 = vmatpush3.bf16.msra.mxu1 %v11433_v53 }
 0x6ec   :  { %9543 = vmatprep.subr.bf16.mxu1 %v11408_v26 }
 0x6ef   :  { %9545 = vmatpush3.bf16.msra.mxu1 %v10239_v11 }
 0x6f0   :  { %9546 = vmatprep.subr.bf16.mxu1 %v11408_v26 }
 0x6f3   :  { %9548 = vmatpush3.bf16.msra.mxu1 %v10241_v36 }
 0x6f4   :  { %9549 = vmatprep.subr.bf16.mxu1 %v11408_v26 }
 0x7a9   :  { %v4029_v59 = vpop.f32.mrb[14].mxu1 }
 0x7aa   :  { %v4033_v5 = vadd.f32 %v10591_v16, %v4029_v59  ;;  %v8006_v54 = vpop.f32.mrb[15].mxu1 }
 0x7ac   :  { %9951 = vtanh.f32 %v4033_v5 }
 0x7b6   :  { %v9952_v58 = vpop.eup %9951 }
 0x7b7   :  { %v11057_v60 = vand.u32 4294901760, %v9952_v58 }
 0x7b9   :  { %v4117_v3 = vsub.f32 %v9952_v58, %v11057_v60 }
 0x7bb   :  { %v4118_v2 = vand.u32 4294901760, %v4117_v3 }
 0x7bd   :  { %v4119_v1 = vsub.f32 %v4117_v3, %v4118_v2 }
 0x7bf   :  { %v4120_v8 = vand.u32 4294901760, %v4119_v1 }
 0x7c1   :  { %8040 = vmatmul.mubr.f32.vlgmr.msra.gmra.mrb[12].mxu0 %v4120_v8 }
 0x7c2   :  { %9407 = vmatpush3.bf16.msra.mxu0 %v10345_v29  ;;  %8074 = vmatprep.mubr.msk.f32.mxu0 %vm9960_vm2, %v11417_v0 }
 0x7c3   :  { %9408 = vmatprep.subr.bf16.mxu0 %v11408_v26 }
 0x7c6   :  { %9410 = vmatpush3.bf16.msra.mxu0 %v10355_v40 }
 0x7c7   :  { %9411 = vmatprep.subr.bf16.mxu0 %v11408_v26 }
 0x7ca   :  { %9413 = vmatpush3.bf16.msra.mxu0 %v10367_v20 }
 0x7cb   :  { %9414 = vmatprep.subr.bf16.mxu0 %v11408_v26 }
 0x7ce   :  { %9416 = vmatpush3.bf16.msra.mxu0 %v10378_v12 }
 0x7cf   :  { %9417 = vmatprep.subr.bf16.mxu0 %v11408_v26 }
 0x7d2   :  { %9419 = vmatpush3.bf16.msra.mxu0 %v10389_v57 }
 0x7d3   :  { %9420 = vmatprep.subr.bf16.mxu0 %v11408_v26 }
 0x7d6   :  { %9422 = vmatpush3.bf16.msra.mxu0 %v10402_v61 }
 0x7d7   :  { %9423 = vmatprep.subr.bf16.mxu0 %v11408_v26 }
 0x7da   :  { %9425 = vmatpush3.bf16.msra.mxu0 %v10411_v13 }
 0x7db   :  { %9426 = vmatprep.subr.bf16.mxu0 %v11408_v26 }
 0x7de   :  { %9428 = vmatpush3.bf16.msra.mxu0 %v10419_v33 }
 0x7df   :  { %9429 = vmatprep.subr.bf16.mxu0 %v11408_v26 }
 0x7e1   :  { %8075 = vmatmul.mubr.f32.vlgmr.msra.gmra.mrb[12].mxu0 %v11057_v60 }
 0x7e2   :  { %9431 = vmatpush3.bf16.msra.mxu0 %v10427_v7  ;;  %8109 = vmatprep.mubr.msk.f32.mxu0 %vm9960_vm2, %v11417_v0 }
 0x7e3   :  { %9432 = vmatprep.subr.bf16.mxu0 %v11408_v26 }
 0x7e6   :  { %9434 = vmatpush3.bf16.msra.mxu0 %v10436_v39 }
 0x7e7   :  { %9435 = vmatprep.subr.bf16.mxu0 %v11408_v26 }
 0x7ea   :  { %9437 = vmatpush3.bf16.msra.mxu0 %v10446_v49 }
 0x7eb   :  { %9438 = vmatprep.subr.bf16.mxu0 %v11408_v26 }
 0x7ee   :  { %9440 = vmatpush3.bf16.msra.mxu0 %v10456_v24 }
 0x7ef   :  { %9441 = vmatprep.subr.bf16.mxu0 %v11408_v26 }
 0x7f2   :  { %9443 = vmatpush3.bf16.msra.mxu0 %v10466_v25 }
 0x7f3   :  { %9444 = vmatprep.subr.bf16.mxu0 %v11408_v26 }
 0x7f6   :  { %9446 = vmatpush3.bf16.msra.mxu0 %v10475_v19 }
 0x7f7   :  { %9447 = vmatprep.subr.bf16.mxu0 %v11408_v26 }
 0x7fa   :  { %9449 = vmatpush3.bf16.msra.mxu0 %v10485_v34 }
 0x7fb   :  { %9450 = vmatprep.subr.bf16.mxu0 %v11408_v26 }
 0x7fe   :  { %9452 = vmatpush3.bf16.msra.mxu0 %v10493_v35 }
 0x7ff   :  { %9453 = vmatprep.subr.bf16.mxu0 %v11408_v26 }
 0x801   :  { %8110 = vmatmul.mubr.f32.vlgmr.msra.gmra.mrb[12].mxu0 %v4117_v3 }
 0x802   :  { %9455 = vmatpush3.bf16.msra.mxu0 %v10032_v22  ;;  %8144 = vmatprep.mubr.msk.f32.mxu0 %vm9960_vm2, %v11417_v0 }
 0x803   :  { %9456 = vmatprep.subr.bf16.mxu0 %v11408_v26 }
 0x806   :  { %9458 = vmatpush3.bf16.msra.mxu0 %v11429_v42 }
 0x807   :  { %9459 = vmatprep.subr.bf16.mxu0 %v11408_v26 }
 0x80a   :  { %9461 = vmatpush3.bf16.msra.mxu0 %v11430_v44 }
 0x80b   :  { %9462 = vmatprep.subr.bf16.mxu0 %v11408_v26 }
 0x80e   :  { %9464 = vmatpush3.bf16.msra.mxu0 %v11431_v45 }
 0x80f   :  { %9465 = vmatprep.subr.bf16.mxu0 %v11408_v26 }
 0x812   :  { %9467 = vmatpush3.bf16.msra.mxu0 %v11432_v52 }
 0x813   :  { %9468 = vmatprep.subr.bf16.mxu0 %v11408_v26 }
 0x816   :  { %9470 = vmatpush3.bf16.msra.mxu0 %v11433_v53 }
 0x817   :  { %9471 = vmatprep.subr.bf16.mxu0 %v11408_v26 }
 0x81a   :  { %9473 = vmatpush3.bf16.msra.mxu0 %v10239_v11 }
 0x81b   :  { %9474 = vmatprep.subr.bf16.mxu0 %v11408_v26 }
 0x81e   :  { %9476 = vmatpush3.bf16.msra.mxu0 %v10241_v36 }
 0x81f   :  { %9477 = vmatprep.subr.bf16.mxu0 %v11408_v26 }
 0x821   :  { %8145 = vmatmul.mubr.f32.vlgmr.msra.gmra.mrb[12].mxu0 %v4118_v2 }
 0x822   :  { %9479 = vmatpush3.bf16.msra.mxu0 %v10316_v4  ;;  %8179 = vmatprep.mubr.msk.f32.mxu0 %vm9960_vm2, %v11417_v0 }
 0x823   :  { %9480 = vmatprep.subr.bf16.mxu0 %v11408_v26 }
 0x826   :  { %9482 = vmatpush3.bf16.msra.mxu0 %v10318_v10 }
 0x827   :  { %9483 = vmatprep.subr.bf16.mxu0 %v11408_v26 }
 0x82a   :  { %9485 = vmatpush3.bf16.msra.mxu0 %v10320_v27 }
 0x82b   :  { %9486 = vmatprep.subr.bf16.mxu0 %v11408_v26 }
 0x82e   :  { %9488 = vmatpush3.bf16.msra.mxu0 %v10322_v28 }
 0x82f   :  { %9489 = vmatprep.subr.bf16.mxu0 %v11408_v26 }
 0x832   :  { %9491 = vmatpush3.bf16.msra.mxu0 %v11434_v46 }
 0x833   :  { %9492 = vmatprep.subr.bf16.mxu0 %v11408_v26 }
 0x836   :  { %9494 = vmatpush3.bf16.msra.mxu0 %v11435_v37 }
 0x837   :  { %9495 = vmatprep.subr.bf16.mxu0 %v11408_v26 }
 0x83a   :  { %9497 = vmatpush3.bf16.msra.mxu0 %v11436_v41 }
 0x83b   :  { %9498 = vmatprep.subr.bf16.mxu0 %v11408_v26 }
 0x83e   :  { %9500 = vmatpush3.bf16.msra.mxu0 %v10339_v9 }
 0x83f   :  { %9501 = vmatprep.subr.bf16.mxu0 %v11408_v26 }
 0x841   :  { %8180 = vmatmul.mubr.f32.vlgmr.msra.gmra.mrb[12].mxu0 %v11057_v60 }
 0x842   :  { %9503 = vmatpush3.bf16.msra.mxu0 %v10032_v22  ;;  %8214 = vmatprep.mubr.msk.f32.mxu0 %vm9960_vm2, %v11417_v0 }
 0x843   :  { %9504 = vmatprep.subr.bf16.mxu0 %v11408_v26 }
 0x846   :  { %9506 = vmatpush3.bf16.msra.mxu0 %v11429_v42 }
 0x847   :  { %9507 = vmatprep.subr.bf16.mxu0 %v11408_v26 }
 0x84a   :  { %9509 = vmatpush3.bf16.msra.mxu0 %v11430_v44 }
 0x84b   :  { %9510 = vmatprep.subr.bf16.mxu0 %v11408_v26 }
 0x84e   :  { %9512 = vmatpush3.bf16.msra.mxu0 %v11431_v45 }
 0x84f   :  { %9513 = vmatprep.subr.bf16.mxu0 %v11408_v26 }
 0x852   :  { %9515 = vmatpush3.bf16.msra.mxu0 %v11432_v52 }
 0x853   :  { %9516 = vmatprep.subr.bf16.mxu0 %v11408_v26 }
 0x856   :  { %9518 = vmatpush3.bf16.msra.mxu0 %v11433_v53 }
 0x857   :  { %9519 = vmatprep.subr.bf16.mxu0 %v11408_v26 }
 0x85a   :  { %9521 = vmatpush3.bf16.msra.mxu0 %v10239_v11 }
 0x85b   :  { %9522 = vmatprep.subr.bf16.mxu0 %v11408_v26 }
 0x85e   :  { %9524 = vmatpush3.bf16.msra.mxu0 %v10241_v36 }
 0x85f   :  { %9669 = vmatprep.subr.bf16.mxu0 %v11408_v26 }
 0x861   :  { %8215 = vmatmul.mubr.f32.vlgmr.msra.gmra.mrb[12].mxu0 %v11057_v60 }
 0x862   :  { %9671 = vmatpush3.bf16.msra.mxu0 %v10032_v22  ;;  %8459 = vmatprep.mubr.msk.f32.mxu0 %vm9960_vm2, %v11417_v0 }
 0x863   :  { %9672 = vmatprep.subr.bf16.mxu0 %v11408_v26 }
 0x866   :  { %9674 = vmatpush3.bf16.msra.mxu0 %v11429_v42 }
 0x867   :  { %9675 = vmatprep.subr.bf16.mxu0 %v11408_v26 }
 0x86a   :  { %9677 = vmatpush3.bf16.msra.mxu0 %v11430_v44 }
 0x86b   :  { %9678 = vmatprep.subr.bf16.mxu0 %v11408_v26 }
 0x86e   :  { %9680 = vmatpush3.bf16.msra.mxu0 %v11431_v45 }
 0x86f   :  { %9681 = vmatprep.subr.bf16.mxu0 %v11408_v26 }
 0x872   :  { %9683 = vmatpush3.bf16.msra.mxu0 %v11432_v52 }
 0x873   :  { %9684 = vmatprep.subr.bf16.mxu0 %v11408_v26 }
 0x876   :  { %9686 = vmatpush3.bf16.msra.mxu0 %v11433_v53 }
 0x877   :  { %9687 = vmatprep.subr.bf16.mxu0 %v11408_v26 }
 0x87a   :  { %9689 = vmatpush3.bf16.msra.mxu0 %v10239_v11 }
 0x87b   :  { %9690 = vmatprep.subr.bf16.mxu0 %v11408_v26 }
 0x87e   :  { %9692 = vmatpush3.bf16.msra.mxu0 %v10241_v36 }
 0x87f   :  { %9693 = vmatprep.subr.bf16.mxu0 %v11408_v26 }
 0x934   :  { %v4672_v16 = vpop.f32.mrb[12].mxu0 }
 0x935   :  { %v4676_v6 = vadd.f32 %v10589_v32, %v4672_v16  ;;  %v8216_v14 = vpop.f32.mrb[13].mxu0 }
 0x937   :  { %9953 = vtanh.f32 %v4676_v6 }
 0x941   :  { %v9954_v23 = vpop.eup %9953 }
 0x942   :  { %v11172_v43 = vand.u32 4294901760, %v9954_v23 }
 0x944   :  { %v4760_v63 = vsub.f32 %v9954_v23, %v11172_v43 }
 0x946   :  { %v4761_v62 = vand.u32 4294901760, %v4760_v63 }
 0x948   :  { %v4762_v38 = vsub.f32 %v4760_v63, %v4761_v62 }
 0x94a   :  { %v4763_v30 = vand.u32 4294901760, %v4762_v38 }
 0x94c   :  { %8250 = vmatmul.mubr.f32.vlgmr.msra.gmra.mrb[16].mxu1 %v4763_v30 }
 0x94d   :  { %9551 = vmatpush3.bf16.msra.mxu1 %v10345_v29  ;;  %8284 = vmatprep.mubr.msk.f32.mxu1 %vm9960_vm2, %v11417_v0 }
 0x94e   :  { %9552 = vmatprep.subr.bf16.mxu1 %v11408_v26 }
 0x951   :  { %9554 = vmatpush3.bf16.msra.mxu1 %v10355_v40 }
 0x952   :  { %9555 = vmatprep.subr.bf16.mxu1 %v11408_v26 }
 0x955   :  { %9557 = vmatpush3.bf16.msra.mxu1 %v10367_v20 }
 0x956   :  { %9558 = vmatprep.subr.bf16.mxu1 %v11408_v26 }
 0x959   :  { %9560 = vmatpush3.bf16.msra.mxu1 %v10378_v12 }
 0x95a   :  { %9561 = vmatprep.subr.bf16.mxu1 %v11408_v26 }
 0x95d   :  { %9563 = vmatpush3.bf16.msra.mxu1 %v10389_v57 }
 0x95e   :  { %9564 = vmatprep.subr.bf16.mxu1 %v11408_v26 }
 0x961   :  { %9566 = vmatpush3.bf16.msra.mxu1 %v10402_v61 }
 0x962   :  { %9567 = vmatprep.subr.bf16.mxu1 %v11408_v26 }
 0x965   :  { %9569 = vmatpush3.bf16.msra.mxu1 %v10411_v13 }
 0x966   :  { %9570 = vmatprep.subr.bf16.mxu1 %v11408_v26 }
 0x969   :  { %9572 = vmatpush3.bf16.msra.mxu1 %v10419_v33 }
 0x96a   :  { %9573 = vmatprep.subr.bf16.mxu1 %v11408_v26 }
 0x96c   :  { %8285 = vmatmul.mubr.f32.vlgmr.msra.gmra.mrb[16].mxu1 %v11172_v43 }
 0x96d   :  { %9575 = vmatpush3.bf16.msra.mxu1 %v10427_v7  ;;  %8319 = vmatprep.mubr.msk.f32.mxu1 %vm9960_vm2, %v11417_v0 }
 0x96e   :  { %9576 = vmatprep.subr.bf16.mxu1 %v11408_v26 }
 0x971   :  { %9578 = vmatpush3.bf16.msra.mxu1 %v10436_v39 }
 0x972   :  { %9579 = vmatprep.subr.bf16.mxu1 %v11408_v26 }
 0x975   :  { %9581 = vmatpush3.bf16.msra.mxu1 %v10446_v49 }
 0x976   :  { %9582 = vmatprep.subr.bf16.mxu1 %v11408_v26 }
 0x979   :  { %9584 = vmatpush3.bf16.msra.mxu1 %v10456_v24 }
 0x97a   :  { %9585 = vmatprep.subr.bf16.mxu1 %v11408_v26 }
 0x97d   :  { %9587 = vmatpush3.bf16.msra.mxu1 %v10466_v25 }
 0x97e   :  { %9588 = vmatprep.subr.bf16.mxu1 %v11408_v26 }
 0x981   :  { %9590 = vmatpush3.bf16.msra.mxu1 %v10475_v19 }
 0x982   :  { %9591 = vmatprep.subr.bf16.mxu1 %v11408_v26 }
 0x985   :  { %9593 = vmatpush3.bf16.msra.mxu1 %v10485_v34 }
 0x986   :  { %9594 = vmatprep.subr.bf16.mxu1 %v11408_v26 }
 0x989   :  { %9596 = vmatpush3.bf16.msra.mxu1 %v10493_v35 }
 0x98a   :  { %9597 = vmatprep.subr.bf16.mxu1 %v11408_v26 }
 0x98c   :  { %8320 = vmatmul.mubr.f32.vlgmr.msra.gmra.mrb[16].mxu1 %v4760_v63 }
 0x98d   :  { %9599 = vmatpush3.bf16.msra.mxu1 %v10032_v22  ;;  %8354 = vmatprep.mubr.msk.f32.mxu1 %vm9960_vm2, %v11417_v0 }
 0x98e   :  { %9600 = vmatprep.subr.bf16.mxu1 %v11408_v26 }
 0x991   :  { %9602 = vmatpush3.bf16.msra.mxu1 %v11429_v42 }
 0x992   :  { %9603 = vmatprep.subr.bf16.mxu1 %v11408_v26 }
 0x995   :  { %9605 = vmatpush3.bf16.msra.mxu1 %v11430_v44 }
 0x996   :  { %9606 = vmatprep.subr.bf16.mxu1 %v11408_v26 }
 0x999   :  { %9608 = vmatpush3.bf16.msra.mxu1 %v11431_v45 }
 0x99a   :  { %9609 = vmatprep.subr.bf16.mxu1 %v11408_v26 }
 0x99d   :  { %9611 = vmatpush3.bf16.msra.mxu1 %v11432_v52 }
 0x99e   :  { %9612 = vmatprep.subr.bf16.mxu1 %v11408_v26 }
 0x9a1   :  { %9614 = vmatpush3.bf16.msra.mxu1 %v11433_v53 }
 0x9a2   :  { %9615 = vmatprep.subr.bf16.mxu1 %v11408_v26 }
 0x9a5   :  { %9617 = vmatpush3.bf16.msra.mxu1 %v10239_v11 }
 0x9a6   :  { %9618 = vmatprep.subr.bf16.mxu1 %v11408_v26 }
 0x9a9   :  { %9620 = vmatpush3.bf16.msra.mxu1 %v10241_v36 }
 0x9aa   :  { %9621 = vmatprep.subr.bf16.mxu1 %v11408_v26 }
 0x9ac   :  { %8355 = vmatmul.mubr.f32.vlgmr.msra.gmra.mrb[16].mxu1 %v4761_v62 }
 0x9ad   :  { %9623 = vmatpush3.bf16.msra.mxu1 %v10316_v4  ;;  %8389 = vmatprep.mubr.msk.f32.mxu1 %vm9960_vm2, %v11417_v0 }
 0x9ae   :  { %9624 = vmatprep.subr.bf16.mxu1 %v11408_v26 }
 0x9b1   :  { %9626 = vmatpush3.bf16.msra.mxu1 %v10318_v10 }
 0x9b2   :  { %9627 = vmatprep.subr.bf16.mxu1 %v11408_v26 }
 0x9b5   :  { %9629 = vmatpush3.bf16.msra.mxu1 %v10320_v27 }
 0x9b6   :  { %9630 = vmatprep.subr.bf16.mxu1 %v11408_v26 }
 0x9b9   :  { %9632 = vmatpush3.bf16.msra.mxu1 %v10322_v28 }
 0x9ba   :  { %9633 = vmatprep.subr.bf16.mxu1 %v11408_v26 }
 0x9bd   :  { %9635 = vmatpush3.bf16.msra.mxu1 %v11434_v46 }
 0x9be   :  { %9636 = vmatprep.subr.bf16.mxu1 %v11408_v26 }
 0x9c1   :  { %9638 = vmatpush3.bf16.msra.mxu1 %v11435_v37 }
 0x9c2   :  { %9639 = vmatprep.subr.bf16.mxu1 %v11408_v26 }
 0x9c5   :  { %9641 = vmatpush3.bf16.msra.mxu1 %v11436_v41 }
 0x9c6   :  { %9642 = vmatprep.subr.bf16.mxu1 %v11408_v26 }
 0x9c9   :  { %9644 = vmatpush3.bf16.msra.mxu1 %v10339_v9 }
 0x9ca   :  { %9645 = vmatprep.subr.bf16.mxu1 %v11408_v26 }
 0x9cc   :  { %8390 = vmatmul.mubr.f32.vlgmr.msra.gmra.mrb[16].mxu1 %v11172_v43 }
 0x9cd   :  { %9647 = vmatpush3.bf16.msra.mxu1 %v10032_v22  ;;  %8424 = vmatprep.mubr.msk.f32.mxu1 %vm9960_vm2, %v11417_v0 }
 0x9ce   :  { %9648 = vmatprep.subr.bf16.mxu1 %v11408_v26 }
 0x9d1   :  { %9650 = vmatpush3.bf16.msra.mxu1 %v11429_v42 }
 0x9d2   :  { %9651 = vmatprep.subr.bf16.mxu1 %v11408_v26 }
 0x9d5   :  { %9653 = vmatpush3.bf16.msra.mxu1 %v11430_v44 }
 0x9d6   :  { %9654 = vmatprep.subr.bf16.mxu1 %v11408_v26 }
 0x9d9   :  { %9656 = vmatpush3.bf16.msra.mxu1 %v11431_v45 }
 0x9da   :  { %9657 = vmatprep.subr.bf16.mxu1 %v11408_v26 }
 0x9dd   :  { %9659 = vmatpush3.bf16.msra.mxu1 %v11432_v52 }
 0x9de   :  { %9660 = vmatprep.subr.bf16.mxu1 %v11408_v26 }
 0x9e1   :  { %9662 = vmatpush3.bf16.msra.mxu1 %v11433_v53 }
 0x9e2   :  { %9663 = vmatprep.subr.bf16.mxu1 %v11408_v26 }
 0x9e5   :  { %9665 = vmatpush3.bf16.msra.mxu1 %v10239_v11 }
 0x9e6   :  { %9666 = vmatprep.subr.bf16.mxu1 %v11408_v26 }
 0x9e9   :  { %9668 = vmatpush3.bf16.msra.mxu1 %v10241_v36 }
 0x9ec   :  { %8425 = vmatmul.mubr.f32.vlgmr.msra.gmra.mrb[16].mxu1 %v11172_v43 }
 0xabf   :  { %v5315_v32 = vpop.f32.mrb[16].mxu1 }
 0xac0   :  { %v5319_v50 = vadd.f32 %v10595_v17, %v5315_v32  ;;  %v8426_v48 = vpop.f32.mrb[17].mxu1 }
 0xac2   :  { %9955 = vtanh.f32 %v5319_v50 }
 0xacc   :  { %v9956_v55 = vpop.eup %9955 }
 0xacd   :  { %v11268_v31 = vand.u32 4294901760, %v9956_v55 }
 0xacf   :  { %v5403_v51 = vsub.f32 %v9956_v55, %v11268_v31 }
 0xad1   :  { %v5404_v21 = vand.u32 4294901760, %v5403_v51 }
 0xad3   :  { %v5405_v47 = vsub.f32 %v5403_v51, %v5404_v21 }
 0xad5   :  { %v5406_v56 = vand.u32 4294901760, %v5405_v47 }
 0xad7   :  { %8460 = vmatmul.mubr.f32.vlgmr.msra.gmra.mrb[14].mxu0 %v5406_v56 }
 0xad8   :  { %9695 = vmatpush3.bf16.msra.mxu0 %v10345_v29  ;;  %8494 = vmatprep.mubr.msk.f32.mxu0 %vm9960_vm2, %v11417_v0 }
 0xad9   :  { %9696 = vmatprep.subr.bf16.mxu0 %v11408_v26 }
 0xadc   :  { %9698 = vmatpush3.bf16.msra.mxu0 %v10355_v40 }
 0xadd   :  { %9699 = vmatprep.subr.bf16.mxu0 %v11408_v26 }
 0xae0   :  { %9701 = vmatpush3.bf16.msra.mxu0 %v10367_v20 }
 0xae1   :  { %9702 = vmatprep.subr.bf16.mxu0 %v11408_v26 }
 0xae4   :  { %9704 = vmatpush3.bf16.msra.mxu0 %v10378_v12 }
 0xae5   :  { %9705 = vmatprep.subr.bf16.mxu0 %v11408_v26 }
 0xae8   :  { %9707 = vmatpush3.bf16.msra.mxu0 %v10389_v57 }
 0xae9   :  { %9708 = vmatprep.subr.bf16.mxu0 %v11408_v26 }
 0xaec   :  { %9710 = vmatpush3.bf16.msra.mxu0 %v10402_v61 }
 0xaed   :  { %9711 = vmatprep.subr.bf16.mxu0 %v11408_v26 }
 0xaf0   :  { %9713 = vmatpush3.bf16.msra.mxu0 %v10411_v13 }
 0xaf1   :  { %9714 = vmatprep.subr.bf16.mxu0 %v11408_v26 }
 0xaf4   :  { %9716 = vmatpush3.bf16.msra.mxu0 %v10419_v33 }
 0xaf5   :  { %9717 = vmatprep.subr.bf16.mxu0 %v11408_v26 }
 0xaf7   :  { %8495 = vmatmul.mubr.f32.vlgmr.msra.gmra.mrb[14].mxu0 %v11268_v31 }
 0xaf8   :  { %9719 = vmatpush3.bf16.msra.mxu0 %v10427_v7  ;;  %8529 = vmatprep.mubr.msk.f32.mxu0 %vm9960_vm2, %v11417_v0 }
 0xaf9   :  { %9720 = vmatprep.subr.bf16.mxu0 %v11408_v26 }
 0xafc   :  { %9722 = vmatpush3.bf16.msra.mxu0 %v10436_v39 }
 0xafd   :  { %9723 = vmatprep.subr.bf16.mxu0 %v11408_v26 }
 0xb00   :  { %9725 = vmatpush3.bf16.msra.mxu0 %v10446_v49 }
 0xb01   :  { %9726 = vmatprep.subr.bf16.mxu0 %v11408_v26 }
 0xb04   :  { %9728 = vmatpush3.bf16.msra.mxu0 %v10456_v24 }
 0xb05   :  { %9729 = vmatprep.subr.bf16.mxu0 %v11408_v26 }
 0xb08   :  { %9731 = vmatpush3.bf16.msra.mxu0 %v10466_v25 }
 0xb09   :  { %9732 = vmatprep.subr.bf16.mxu0 %v11408_v26 }
 0xb0c   :  { %9734 = vmatpush3.bf16.msra.mxu0 %v10475_v19 }
 0xb0d   :  { %9735 = vmatprep.subr.bf16.mxu0 %v11408_v26 }
 0xb10   :  { %9737 = vmatpush3.bf16.msra.mxu0 %v10485_v34 }
 0xb11   :  { %9738 = vmatprep.subr.bf16.mxu0 %v11408_v26 }
 0xb14   :  { %9740 = vmatpush3.bf16.msra.mxu0 %v10493_v35 }
 0xb15   :  { %9741 = vmatprep.subr.bf16.mxu0 %v11408_v26 }
 0xb17   :  { %8530 = vmatmul.mubr.f32.vlgmr.msra.gmra.mrb[14].mxu0 %v5403_v51 }
 0xb18   :  { %9743 = vmatpush3.bf16.msra.mxu0 %v10032_v22  ;;  %8564 = vmatprep.mubr.msk.f32.mxu0 %vm9960_vm2, %v11417_v0 }
 0xb19   :  { %9744 = vmatprep.subr.bf16.mxu0 %v11408_v26 }
 0xb1c   :  { %9746 = vmatpush3.bf16.msra.mxu0 %v11429_v42 }
 0xb1d   :  { %9747 = vmatprep.subr.bf16.mxu0 %v11408_v26 }
 0xb20   :  { %9749 = vmatpush3.bf16.msra.mxu0 %v11430_v44 }
 0xb21   :  { %9750 = vmatprep.subr.bf16.mxu0 %v11408_v26 }
 0xb24   :  { %9752 = vmatpush3.bf16.msra.mxu0 %v11431_v45 }
 0xb25   :  { %9753 = vmatprep.subr.bf16.mxu0 %v11408_v26 }
 0xb28   :  { %9755 = vmatpush3.bf16.msra.mxu0 %v11432_v52 }
 0xb29   :  { %9756 = vmatprep.subr.bf16.mxu0 %v11408_v26 }
 0xb2c   :  { %9758 = vmatpush3.bf16.msra.mxu0 %v11433_v53 }
 0xb2d   :  { %9759 = vmatprep.subr.bf16.mxu0 %v11408_v26 }
 0xb30   :  { %9761 = vmatpush3.bf16.msra.mxu0 %v10239_v11 }
 0xb31   :  { %9762 = vmatprep.subr.bf16.mxu0 %v11408_v26 }
 0xb34   :  { %9764 = vmatpush3.bf16.msra.mxu0 %v10241_v36 }
 0xb35   :  { %9765 = vmatprep.subr.bf16.mxu0 %v11408_v26 }
 0xb37   :  { %8565 = vmatmul.mubr.f32.vlgmr.msra.gmra.mrb[14].mxu0 %v5404_v21 }
 0xb38   :  { %9767 = vmatpush3.bf16.msra.mxu0 %v10316_v4  ;;  %8599 = vmatprep.mubr.msk.f32.mxu0 %vm9960_vm2, %v11417_v0 }
 0xb39   :  { %9768 = vmatprep.subr.bf16.mxu0 %v11408_v26 }
 0xb3c   :  { %9770 = vmatpush3.bf16.msra.mxu0 %v10318_v10  ;;  %v5983_v10 = vld [vmem:[%s11373_s1 + $0x98] ss:$0 sm:$0xff] }
 0xb3d   :  { %9771 = vmatprep.subr.bf16.mxu0 %v11408_v26 }
 0xb40   :  { %9773 = vmatpush3.bf16.msra.mxu0 %v10320_v27 }
 0xb41   :  { %9774 = vmatprep.subr.bf16.mxu0 %v11408_v26 }
 0xb44   :  { %9776 = vmatpush3.bf16.msra.mxu0 %v10322_v28 }
 0xb45   :  { %9777 = vmatprep.subr.bf16.mxu0 %v11408_v26 }
 0xb48   :  { %9779 = vmatpush3.bf16.msra.mxu0 %v11434_v46 }
 0xb49   :  { %9780 = vmatprep.subr.bf16.mxu0 %v11408_v26 }
 0xb4c   :  { %9782 = vmatpush3.bf16.msra.mxu0 %v11435_v37 }
 0xb4d   :  { %9783 = vmatprep.subr.bf16.mxu0 %v11408_v26 }
 0xb50   :  { %9785 = vmatpush3.bf16.msra.mxu0 %v11436_v41 }
 0xb51   :  { %9786 = vmatprep.subr.bf16.mxu0 %v11408_v26 }
 0xb54   :  { %9788 = vmatpush3.bf16.msra.mxu0 %v10339_v9 }
 0xb55   :  { %9789 = vmatprep.subr.bf16.mxu0 %v11408_v26 }
 0xb57   :  { %8600 = vmatmul.mubr.f32.vlgmr.msra.gmra.mrb[14].mxu0 %v11268_v31 }
 0xb58   :  { %9791 = vmatpush3.bf16.msra.mxu0 %v10032_v22  ;;  %8634 = vmatprep.mubr.msk.f32.mxu0 %vm9960_vm2, %v11417_v0 }
 0xb59   :  { %9792 = vmatprep.subr.bf16.mxu0 %v11408_v26 }
 0xb5c   :  { %9794 = vmatpush3.bf16.msra.mxu0 %v11429_v42 }
 0xb5d   :  { %9795 = vmatprep.subr.bf16.mxu0 %v11408_v26 }
 0xb60   :  { %9797 = vmatpush3.bf16.msra.mxu0 %v11430_v44 }
 0xb61   :  { %9798 = vmatprep.subr.bf16.mxu0 %v11408_v26 }
 0xb64   :  { %9800 = vmatpush3.bf16.msra.mxu0 %v11431_v45 }
 0xb65   :  { %9801 = vmatprep.subr.bf16.mxu0 %v11408_v26 }
 0xb68   :  { %9803 = vmatpush3.bf16.msra.mxu0 %v11432_v52 }
 0xb69   :  { %9804 = vmatprep.subr.bf16.mxu0 %v11408_v26 }
 0xb6c   :  { %9806 = vmatpush3.bf16.msra.mxu0 %v11433_v53 }
 0xb6d   :  { %9807 = vmatprep.subr.bf16.mxu0 %v11408_v26 }
 0xb70   :  { %9809 = vmatpush3.bf16.msra.mxu0 %v10239_v11  ;;  %v5984_v11 = vld [vmem:[%s11373_s1 + $0xa0] ss:$0 sm:$0xff] }
 0xb71   :  { %9810 = vmatprep.subr.bf16.mxu0 %v11408_v26 }
 0xb74   :  { %9812 = vmatpush3.bf16.msra.mxu0 %v10241_v36 }
 0xb77   :  { %8635 = vmatmul.mubr.f32.vlgmr.msra.gmra.mrb[14].mxu0 %v11268_v31 }
 0xc4a   :  { %v5958_v22 = vpop.f32.mrb[14].mxu0 }
 0xc4b   :  { %v5962_v0 = vadd.f32 %v10593_v15, %v5958_v22  ;;  %v8636_v4 = vpop.f32.mrb[15].mxu0 }
 0xc4d   :  { %9957 = vtanh.f32 %v5962_v0 }
 0xc57   :  { %v9958_v27 = vpop.eup %9957 }
 0xc58   :  { %v5968_v28 = vmul.f32 %v9958_v27, %v5983_v10 }
 0xc5a   :  { %5969 = vadd.xlane.f32.xlu0 %v5968_v28 }
 0xce7   :  { %v5970_v26 = vpop.xlane.xlu0 %5969 }
 0xce8   :  { %v5975_v36 = vadd.f32 %v5984_v11, %v5970_v26 }
 0xcea   :  { %5977 = vst.msk [vmem:[%s11375_s2] sm:$0xff] %vm5976_vm3, %v5975_v36 }

</bundles_post_ra>
